<compile_context>
chip_gen: v5e
topology: v5e:2x2
jax: 0.10.0
libtpu: 0.0.40
codegen_flags: <defaults>
</compile_context>

<pallas_src>
import numpy as np
import jax
import jax.numpy as jnp
from jax import lax
from jax.experimental import pallas as pl
from jax.experimental.pallas import tpu as pltpu

EMBED = 8            # 2 ** algebra.dim (Cl(3,0))
NBLADE = 8
SEQ = 8              # seq_lenght
HIDDEN = 32          # hidden_dim
VDIM = 120           # v_proj output features
CATDIM = EMBED + VDIM   # 128
BATCH = 2
EPS = 1e-5


def _clifford_cayley():
    """Cayley table cayley[i, j, k] = coeff of blade j in (blade_i * blade_k), Cl(3,0)."""
    masks = [0b000, 0b001, 0b010, 0b100, 0b011, 0b101, 0b110, 0b111]
    idx_of = {m: i for i, m in enumerate(masks)}

    def reorder_sign(a, b):
        a >>= 1
        s = 0
        while a:
            s += bin(a & b).count("1")
            a >>= 1
        return -1.0 if (s & 1) else 1.0

    cay = np.zeros((8, 8, 8), dtype=np.float32)
    for i, ma in enumerate(masks):
        for k, mb in enumerate(masks):
            j = idx_of[ma ^ mb]
            cay[i, j, k] = reorder_sign(ma, mb)   # euclidean metric: e_i ** 2 = +1
    return cay


# -----------------------------------------------------------------------------
# Pallas kernel: full TransformerEncoderLayerGA forward for one batch block.
# All activations are 2-D (rows, lanes) slabs; rows = bb * SEQ tokens,
# pairs = rows * SEQ (query, key) pairs ordered (b, m, n).
# -----------------------------------------------------------------------------
def encoder_layer_kernel(
    x_ref,                       # (bb, S, 8)                     input block
    slab_ref,                    # (16, 128) f32                  packed gains / biases
    wv_ref,                      # (8, 128) f32                   v_proj weight, pre-shifted to lanes 8:128
    wqk_ref, bqk_ref,            # (S, 2S, 8) [m, n', i], (2S, 8) MVLinear q|k
    repq_ref, repk_ref,          # (P, R) bf16                    0/1 row replication to (q,k) pairs
    rq_ref, tk_ref,              # (8, 64) bf16                   0/1 blade -> (i,k) lane expansion
    cw1_ref,                     # (64, H) bf16                   cayley folded into ffn_att_prj W1
    ex_ref,                      # (8, 128) f32                   0/1 placement of x into lanes 0:8
    winf_ref,                    # (128, H) f32                   fc_in (merged, K = 128)
    wout_ref,                    # (H, 128) f32                   fc_out
    o_ref,                       # (bb, S, 128)
):
    bb = x_ref.shape[0]
    rows = bb * SEQ                               # tokens in this block

    # ---- unpack the bias/gain slab (one dense load, static register slices) ------
    slab = slab_ref[...]
    g1, be1 = slab[0:1, 0:EMBED], slab[1:2, 0:EMBED]
    bv = slab[2:3, :]                             # already shifted to lanes 8:128
    ggp, bgp = slab[3:4, 0:EMBED], slab[4:5, 0:EMBED]
    b1 = slab[5:6, 0:HIDDEN]
    w2 = slab[6:7, 0:HIDDEN].reshape(1, 1, HIDDEN)
    b2 = slab[7:8, 0:1]
    b_in = slab[8:9, 0:HIDDEN]
    b_out = slab[9:10, :]
    g2, be2 = slab[10:11, :], slab[11:12, :]

    def layer_norm(z, g, b):
        mu = jnp.mean(z, axis=-1, keepdims=True)
        var = jnp.mean((z - mu) ** 2, axis=-1, keepdims=True)
        return (z - mu) * lax.rsqrt(var + EPS) * g + b

    # ---- norm1 --------------------------------------------------------------------
    x2 = x_ref[...].reshape(rows, EMBED)                                       # (R, 8)
    # place the raw x into lanes 0:8 of the 128-lane concat slab (off critical path)
    x_wide = jnp.dot(x2, ex_ref[...], preferred_element_type=jnp.float32)      # (R, 128)
    xn2 = layer_norm(x2, g1, be1)

    # ---- SelfAttentionGA.v_proj (output pre-shifted into lanes 8:128) --------------
    v = jnp.dot(xn2, wv_ref[...], preferred_element_type=jnp.float32) + bv     # (R, 128)
    # per-batch sum over the sequence, broadcast back to every token row (no matmul)
    vsum = jnp.sum(v.reshape(bb, SEQ, CATDIM), axis=1, keepdims=True)          # (bb, 1, 128)
    vsum_rows = jnp.broadcast_to(vsum, (bb, SEQ, CATDIM)).reshape(rows, CATDIM)

    # ---- fused MVLinear q|k, tree-added (chain depth 3 instead of 8) ----------------
    # qk[b, n', i] = bias[n', i] + sum_m Wqk[m, n', i] * xn[b, m, i]
    xn3 = xn2.reshape(bb, SEQ, EMBED)
    t = [wqk_ref[m][None, :, :] * xn3[:, m:m + 1, :] for m in range(SEQ)]      # (bb, 2S, 8)
    qk = bqk_ref[...][None, :, :] + (((t[0] + t[1]) + (t[2] + t[3]))
                                     + ((t[4] + t[5]) + (t[6] + t[7])))
    qk = layer_norm(qk, ggp, bgp)                 # shared gp_layer LayerNorm
    q2 = qk[:, :SEQ, :].reshape(rows, EMBED)      # (R, 8)
    k2 = qk[:, SEQ:, :].reshape(rows, EMBED)      # (R, 8)

    # ---- geometric product for every (query, key) pair — bf16 on the MXU ------------
    # (fp16 autocast in PyTorch; this path reaches the output only via softmax row-sums)
    q_pairs = jnp.dot(repq_ref[...], q2.astype(jnp.bfloat16),
                      preferred_element_type=jnp.float32)                      # (P, 8)
    k_pairs = jnp.dot(repk_ref[...], k2.astype(jnp.bfloat16),
                      preferred_element_type=jnp.float32)                      # (P, 8)
    q_lanes = jnp.dot(q_pairs.astype(jnp.bfloat16), rq_ref[...],
                      preferred_element_type=jnp.float32)                      # (P, 64)
    k_lanes = jnp.dot(k_pairs.astype(jnp.bfloat16), tk_ref[...],
                      preferred_element_type=jnp.float32)                      # (P, 64)
    prod = (q_lanes * k_lanes).astype(jnp.bfloat16)   # elementwise in f32 (v5e), bf16 to MXU

    # ---- ffn_att_prj with the Cayley table folded into W1 ---------------------------
    h1 = jnp.maximum(jnp.dot(prod, cw1_ref[...],
                             preferred_element_type=jnp.float32) + b1, 0.0)    # (P, H)
    scores = jnp.sum(h1.reshape(rows, SEQ, HIDDEN) * w2, axis=-1) + b2         # (R, S)

    # ---- softmax over keys; attention application ------------------------------------
    # torch.einsum('bqk,bvd->bqd', probs, v) has no shared contracted index, so
    # attn[q, d] = (sum_k probs[q, k]) * (sum_s v[s, d]); computed exactly that way.
    smax = jnp.max(scores, axis=-1, keepdims=True)
    sexp = jnp.exp(scores - smax)
    probs = sexp / jnp.sum(sexp, axis=-1, keepdims=True)   # exact divide (feeds the output)
    prow = jnp.sum(probs, axis=-1, keepdims=True)          # (R, 1), ~1.0
    attn = prow * vsum_rows                                # (R, 128); lanes 0:8 are zero

    # ---- concat([x, attn]) in registers; merged K=128 fc_in; residual; norm2 ---------
    xc = x_wide + attn                                                          # (R, 128)
    hmid = jnp.maximum(jnp.dot(xc, winf_ref[...],
                               preferred_element_type=jnp.float32) + b_in, 0.0)  # (R, H)
    ff = jnp.dot(hmid, wout_ref[...], preferred_element_type=jnp.float32) + b_out
    y = layer_norm(xc + ff, g2, be2)                                            # (R, 128)
    o_ref[...] = y.reshape(bb, SEQ, CATDIM)


# -----------------------------------------------------------------------------
# Host-side packing of module parameters into kernel operand layouts.
# -----------------------------------------------------------------------------
def _pack_weights(p):
    # MVLinear q|k weights, reordered to [m, n', blade] with n' = [q rows | k rows]
    wq_m = jnp.transpose(p['wq_exp'], (1, 0, 2))
    wk_m = jnp.transpose(p['wk_exp'], (1, 0, 2))
    wqk = jnp.concatenate([wq_m, wk_m], axis=1)                       # (S, 2S, 8)
    bqk = jnp.concatenate([p['bq_emb'], p['bk_emb']], axis=0)         # (2S, 8)

    # 0/1 blade -> (i, k) lane-expansion matrices (exact in bf16)
    lane = np.arange(NBLADE * NBLADE)
    rq = np.zeros((NBLADE, NBLADE * NBLADE), np.float32)
    rq[lane // NBLADE, lane] = 1.0                                    # lane i*8+k <- x[i]
    tk = np.zeros((NBLADE, NBLADE * NBLADE), np.float32)
    tk[lane % NBLADE, lane] = 1.0                                     # lane i*8+k <- x[k]

    # Cayley table packed as [(i*8+k), j], folded into ffn_att_prj's first weight
    c64 = jnp.transpose(p['cay'], (0, 2, 1)).reshape(NBLADE * NBLADE, NBLADE)
    cw1 = jnp.dot(c64, jnp.transpose(p['w1']))                        # (64, H)

    # v_proj weight pre-shifted to output lanes 8:128 so attn lands directly in its
    # slot of concat([x, attn]) with no in-kernel lane-offset shuffle.
    wv_pad = jnp.zeros((EMBED, CATDIM), jnp.float32).at[:, EMBED:].set(p['wv_t'])

    # 0/1 placement of x into lanes 0:8 of the concat
    ex = np.zeros((EMBED, CATDIM), np.float32)
    ex[np.arange(EMBED), np.arange(EMBED)] = 1.0

    # all tiny gains / biases packed into a single (16, 128) slab (one operand / DMA)
    slab = jnp.zeros((16, CATDIM), jnp.float32)
    slab = slab.at[0, :EMBED].set(p['g1'][0])
    slab = slab.at[1, :EMBED].set(p['be1'][0])
    slab = slab.at[2, EMBED:].set(p['bv'][0])          # pre-shifted like wv
    slab = slab.at[3, :EMBED].set(p['ggp'][0])
    slab = slab.at[4, :EMBED].set(p['bgp'][0])
    slab = slab.at[5, :HIDDEN].set(p['b1'])
    slab = slab.at[6, :HIDDEN].set(p['w2'])
    slab = slab.at[7, 0].set(p['b2'])
    slab = slab.at[8, :HIDDEN].set(p['bin'][0])
    slab = slab.at[9, :].set(p['bout'][0])
    slab = slab.at[10, :].set(p['g2'][0])
    slab = slab.at[11, :].set(p['be2'][0])

    return dict(
        slab=slab, wv=wv_pad, wqk=wqk, bqk=bqk,
        rq=jnp.asarray(rq, jnp.bfloat16), tk=jnp.asarray(tk, jnp.bfloat16),
        cw1=cw1.astype(jnp.bfloat16), ex=jnp.asarray(ex),
        winf=p['win_t'], wout=p['wout_t'])


def _pair_replication_mats(bb):
    """0/1 matrices replicating token rows (b, s) to (b, m, n) pair rows.
    Block-diagonal over the batch: MAC waste grows O(bb^2) vs O(bb) useful work,
    negligible at the bb <= 32 cap used here (switch to a batched per-S^2 form if the
    cap is ever raised)."""
    rows = bb * SEQ
    pair = np.arange(rows * SEQ)
    b = pair // (SEQ * SEQ)
    m = (pair // SEQ) % SEQ
    n = pair % SEQ
    repq = np.zeros((rows * SEQ, rows), np.float32)
    repq[pair, b * SEQ + m] = 1.0
    repk = np.zeros((rows * SEQ, rows), np.float32)
    repk[pair, b * SEQ + n] = 1.0
    return jnp.asarray(repq, jnp.bfloat16), jnp.asarray(repk, jnp.bfloat16)


def _pick_block_batch(batch):
    """Batch elements folded into one grid step. Target rows = bb*SEQ up to 256 to fill
    the MXU M dimension and amortize per-step overhead; when the batch permits, keep the
    number of grid steps even / >= 2 so the "parallel" grid axis can shard across v7x's
    two TensorCores without shrinking rows below 128."""
    divisors = [d for d in range(1, batch + 1) if batch % d == 0]
    bb = max(d for d in divisors if d * SEQ <= 256)
    if batch // bb == 1:
        alt = [d for d in divisors if d < bb and (batch // d) % 2 == 0 and d * SEQ >= 128]
        if alt:
            bb = max(alt)
    return bb


# -----------------------------------------------------------------------------
# Wrapper
# -----------------------------------------------------------------------------
def transformer_encoder_layer_ga(x, p):
    batch = x.shape[0]
    bb = _pick_block_batch(batch)
    nblk = batch // bb
    rows = bb * SEQ
    pairs = rows * SEQ

    w = _pack_weights(p)
    repq, repk = _pair_replication_mats(bb)

    operands = (w['slab'], w['wv'], w['wqk'], w['bqk'], repq, repk,
                w['rq'], w['tk'], w['cw1'], w['ex'], w['winf'], w['wout'])

    def full_spec(a):
        zeros = (0,) * a.ndim
        return pl.BlockSpec(a.shape, lambda b, _z=zeros: _z)

    in_specs = [pl.BlockSpec((bb, SEQ, EMBED), lambda b: (b, 0, 0))]
    in_specs += [full_spec(a) for a in operands]

    # Advisory cost: weight operands are fetched once (constant index maps); only the
    # x / output tiles scale with the grid.
    flops_blk = 2 * (rows * EMBED * CATDIM            # x placement
                     + rows * EMBED * CATDIM          # v_proj
                     + 2 * pairs * rows * EMBED       # pair replication
                     + 2 * pairs * EMBED * 64         # blade -> lane expansion
                     + pairs * 64 * HIDDEN            # fused cayley + W1
                     + rows * CATDIM * HIDDEN         # fc_in (merged)
                     + rows * HIDDEN * CATDIM)        # fc_out
    weight_bytes = sum(int(a.size) * a.dtype.itemsize for a in operands)
    cost = pl.CostEstimate(
        flops=flops_blk * nblk,
        transcendentals=rows * (SEQ + 4) * nblk,
        bytes_accessed=weight_bytes + int(x.size) * x.dtype.itemsize
                       + batch * SEQ * CATDIM * 4)

    return pl.pallas_call(
        encoder_layer_kernel,
        out_shape=jax.ShapeDtypeStruct((batch, SEQ, CATDIM), jnp.float32),
        grid=(nblk,),
        in_specs=in_specs,
        out_specs=pl.BlockSpec((bb, SEQ, CATDIM), lambda b: (b, 0, 0)),
        compiler_params=pltpu.CompilerParams(
            dimension_semantics=("parallel",)),
        cost_estimate=cost,
    )(x, *operands)


# -----------------------------------------------------------------------------
# Deterministic parameter construction (shapes dictated by the module __init__)
# -----------------------------------------------------------------------------
def make_params(key):
    kit = iter(jax.random.split(key, 32))

    def nrm(shape, scale):
        return scale * jax.random.normal(next(kit), shape, jnp.float32)

    p = {}
    p['g1'] = 1.0 + nrm((1, EMBED), 0.05)
    p['be1'] = nrm((1, EMBED), 0.05)
    p['wv_t'] = nrm((EMBED, VDIM), 0.35)                  # v_proj weight (in, out)
    p['bv'] = nrm((1, VDIM), 0.05)

    sub_idx = jnp.array([0, 1, 1, 1, 2, 2, 2, 3])         # repeat_interleave(subspaces=[1,3,3,1])
    p['wq_exp'] = nrm((SEQ, SEQ, 4), 0.3)[..., sub_idx]   # (n, m, blade)
    p['wk_exp'] = nrm((SEQ, SEQ, 4), 0.3)[..., sub_idx]
    bq = nrm((SEQ,), 0.05)
    bk = nrm((SEQ,), 0.05)
    p['bq_emb'] = jnp.zeros((SEQ, EMBED), jnp.float32).at[:, 0].set(bq)   # bias in scalar blade
    p['bk_emb'] = jnp.zeros((SEQ, EMBED), jnp.float32).at[:, 0].set(bk)

    p['ggp'] = 1.0 + nrm((1, EMBED), 0.05)
    p['bgp'] = nrm((1, EMBED), 0.05)

    p['cay'] = jnp.asarray(_clifford_cayley())            # (i, j, k)

    p['w1'] = nrm((HIDDEN, NBLADE), 0.35)                 # ffn_att_prj Linear(8, hidden)
    p['b1'] = nrm((HIDDEN,), 0.05)
    p['w2'] = nrm((HIDDEN,), 0.2)                         # Linear(hidden, 1)
    p['b2'] = nrm((), 0.05)

    p['win_t'] = nrm((CATDIM, HIDDEN), 0.09)              # fc_in weight (in, out)
    p['bin'] = nrm((1, HIDDEN), 0.05)
    p['wout_t'] = nrm((HIDDEN, CATDIM), 0.18)             # fc_out weight (in, out)
    p['bout'] = nrm((1, CATDIM), 0.05)
    p['g2'] = 1.0 + nrm((1, CATDIM), 0.05)
    p['be2'] = nrm((1, CATDIM), 0.05)
    return p


# -----------------------------------------------------------------------------
# Pure-JAX reference (same math as the PyTorch forward) for validation
# -----------------------------------------------------------------------------
def reference_forward(x, p):
    HI = lax.Precision.HIGHEST

    def ln(z, g, b):
        mu = jnp.mean(z, axis=-1, keepdims=True)
        var = jnp.mean((z - mu) ** 2, axis=-1, keepdims=True)
        return (z - mu) / jnp.sqrt(var + EPS) * g + b

    xn = ln(x, p['g1'], p['be1'])
    v = jnp.einsum('bsi,id->bsd', xn, p['wv_t'], precision=HI) + p['bv']
    q = jnp.einsum('bmi,nmi->bni', xn, p['wq_exp'], precision=HI) + p['bq_emb']
    k = jnp.einsum('bmi,nmi->bni', xn, p['wk_exp'], precision=HI) + p['bk_emb']
    q = ln(q, p['ggp'], p['bgp'])
    k = ln(k, p['ggp'], p['bgp'])

    # TODO(synk): torch autocast runs the two blocks below in float16; float32 here.
    gp = jnp.einsum('bmi,ijk,bnk->bmnj', q, p['cay'], k, precision=HI)           # (B, S, S, 8)
    h = jnp.maximum(jnp.einsum('bmnj,hj->bmnh', gp, p['w1'], precision=HI) + p['b1'], 0.0)
    scores = jnp.einsum('bmnh,h->bmn', h, p['w2'], precision=HI) + p['b2']
    probs = jax.nn.softmax(scores, axis=-1)
    attn = jnp.einsum('bqk,bvd->bqd', probs, v, precision=HI)

    xc = jnp.concatenate([x, attn], axis=-1)
    hh = jnp.maximum(jnp.einsum('bsc,ch->bsh', xc, p['win_t'], precision=HI) + p['bin'], 0.0)
    ff = jnp.einsum('bsh,hc->bsc', hh, p['wout_t'], precision=HI) + p['bout']
    return ln(xc + ff, p['g2'], p['be2'])


if __name__ == "__main__":
    root = jax.random.PRNGKey(0)
    kx, kp = jax.random.split(root)
    params = make_params(kp)
    x = jax.random.normal(kx, (BATCH, SEQ, EMBED), jnp.float32)

    y = transformer_encoder_layer_ga(x, params)
    y = jax.block_until_ready(y)

    y_ref = reference_forward(x, params)
    assert y.shape == (BATCH, SEQ, CATDIM)
    max_err = float(jnp.max(jnp.abs(y - y_ref)))
    assert max_err < 2e-2, f"mismatch vs reference: max abs err {max_err}"
    print("KERNEL_OK")
</pallas_src>

<mosaic_0001>
module attributes {stable_mosaic.version = 11 : i64} {
  func.func @encoder_layer_kernel(%arg0: i32, %arg1: memref<2x8x8xf32, #tpu.memory_space<vmem>>, %arg2: memref<16x128xf32, #tpu.memory_space<vmem>>, %arg3: memref<8x128xf32, #tpu.memory_space<vmem>>, %arg4: memref<8x16x8xf32, #tpu.memory_space<vmem>>, %arg5: memref<16x8xf32, #tpu.memory_space<vmem>>, %arg6: memref<128x16xbf16, #tpu.memory_space<vmem>>, %arg7: memref<128x16xbf16, #tpu.memory_space<vmem>>, %arg8: memref<8x64xbf16, #tpu.memory_space<vmem>>, %arg9: memref<8x64xbf16, #tpu.memory_space<vmem>>, %arg10: memref<64x32xbf16, #tpu.memory_space<vmem>>, %arg11: memref<8x128xf32, #tpu.memory_space<vmem>>, %arg12: memref<128x32xf32, #tpu.memory_space<vmem>>, %arg13: memref<32x128xf32, #tpu.memory_space<vmem>>, %arg14: memref<2x8x128xf32, #tpu.memory_space<vmem>>) attributes {dimension_semantics = [#tpu.dimension_semantics<parallel>], iteration_bounds = array<i64: 1>, scalar_prefetch = 0 : i64, scratch_operands = 0 : i64, tpu.core_type = #tpu.core_type<tc>, window_params = [{transform_indices = @transform_0, window_bounds = array<i64: 2, 8, 8>}, {pipeline_mode = #tpu.pipeline_mode<synchronous>, transform_indices = @transform_1, window_bounds = array<i64: 16, 128>}, {pipeline_mode = #tpu.pipeline_mode<synchronous>, transform_indices = @transform_2, window_bounds = array<i64: 8, 128>}, {pipeline_mode = #tpu.pipeline_mode<synchronous>, transform_indices = @transform_3, window_bounds = array<i64: 8, 16, 8>}, {pipeline_mode = #tpu.pipeline_mode<synchronous>, transform_indices = @transform_4, window_bounds = array<i64: 16, 8>}, {pipeline_mode = #tpu.pipeline_mode<synchronous>, transform_indices = @transform_5, window_bounds = array<i64: 128, 16>}, {pipeline_mode = #tpu.pipeline_mode<synchronous>, transform_indices = @transform_6, window_bounds = array<i64: 128, 16>}, {pipeline_mode = #tpu.pipeline_mode<synchronous>, transform_indices = @transform_7, window_bounds = array<i64: 8, 64>}, {pipeline_mode = #tpu.pipeline_mode<synchronous>, transform_indices = @transform_8, window_bounds = array<i64: 8, 64>}, {pipeline_mode = #tpu.pipeline_mode<synchronous>, transform_indices = @transform_9, window_bounds = array<i64: 64, 32>}, {pipeline_mode = #tpu.pipeline_mode<synchronous>, transform_indices = @transform_10, window_bounds = array<i64: 8, 128>}, {pipeline_mode = #tpu.pipeline_mode<synchronous>, transform_indices = @transform_11, window_bounds = array<i64: 128, 32>}, {pipeline_mode = #tpu.pipeline_mode<synchronous>, transform_indices = @transform_12, window_bounds = array<i64: 32, 128>}, {transform_indices = @transform_13, window_bounds = array<i64: 2, 8, 128>}]} {
    %c0 = arith.constant 0 : index
    %c0_0 = arith.constant 0 : index
    %0 = vector.load %arg2[%c0, %c0_0] : memref<16x128xf32, #tpu.memory_space<vmem>>, vector<16x128xf32>
    %1 = vector.extract_strided_slice %0 {offsets = [0, 0], sizes = [1, 8], strides = [1, 1]} : vector<16x128xf32> to vector<1x8xf32>
    %2 = vector.extract_strided_slice %0 {offsets = [1, 0], sizes = [1, 8], strides = [1, 1]} : vector<16x128xf32> to vector<1x8xf32>
    %3 = vector.extract_strided_slice %0 {offsets = [2, 0], sizes = [1, 128], strides = [1, 1]} : vector<16x128xf32> to vector<1x128xf32>
    %4 = vector.extract_strided_slice %0 {offsets = [3, 0], sizes = [1, 8], strides = [1, 1]} : vector<16x128xf32> to vector<1x8xf32>
    %5 = vector.extract_strided_slice %0 {offsets = [4, 0], sizes = [1, 8], strides = [1, 1]} : vector<16x128xf32> to vector<1x8xf32>
    %6 = vector.extract_strided_slice %0 {offsets = [5, 0], sizes = [1, 32], strides = [1, 1]} : vector<16x128xf32> to vector<1x32xf32>
    %7 = vector.extract_strided_slice %0 {offsets = [6, 0], sizes = [1, 32], strides = [1, 1]} : vector<16x128xf32> to vector<1x32xf32>
    %8 = vector.shape_cast %7 : vector<1x32xf32> to vector<1x1x32xf32>
    %9 = vector.extract_strided_slice %0 {offsets = [7, 0], sizes = [1, 1], strides = [1, 1]} : vector<16x128xf32> to vector<1x1xf32>
    %10 = vector.extract_strided_slice %0 {offsets = [8, 0], sizes = [1, 32], strides = [1, 1]} : vector<16x128xf32> to vector<1x32xf32>
    %11 = vector.extract_strided_slice %0 {offsets = [9, 0], sizes = [1, 128], strides = [1, 1]} : vector<16x128xf32> to vector<1x128xf32>
    %12 = vector.extract_strided_slice %0 {offsets = [10, 0], sizes = [1, 128], strides = [1, 1]} : vector<16x128xf32> to vector<1x128xf32>
    %13 = vector.extract_strided_slice %0 {offsets = [11, 0], sizes = [1, 128], strides = [1, 1]} : vector<16x128xf32> to vector<1x128xf32>
    %c0_1 = arith.constant 0 : index
    %c0_2 = arith.constant 0 : index
    %c0_3 = arith.constant 0 : index
    %14 = vector.load %arg1[%c0_1, %c0_2, %c0_3] : memref<2x8x8xf32, #tpu.memory_space<vmem>>, vector<2x8x8xf32>
    %15 = vector.shape_cast %14 : vector<2x8x8xf32> to vector<16x8xf32>
    %c0_4 = arith.constant 0 : index
    %c0_5 = arith.constant 0 : index
    %16 = vector.load %arg11[%c0_4, %c0_5] : memref<8x128xf32, #tpu.memory_space<vmem>>, vector<8x128xf32>
    %cst = arith.constant dense<0.000000e+00> : vector<16x128xf32>
    %17 = tpu.matmul %15, %16, %cst {dimension_numbers = #tpu.dot_dimension_numbers<[1], [0], [0], [1], [0, 0, 1, 1], [], []>} : vector<16x8xf32>, vector<8x128xf32>, vector<16x128xf32> -> vector<16x128xf32>
    %cst_6 = arith.constant dense<0.000000e+00> : vector<16xf32>
    %18 = vector.multi_reduction <add>, %15, %cst_6 [1] : vector<16x8xf32> to vector<16xf32>
    %19 = vector.shape_cast %18 : vector<16xf32> to vector<16x1xf32>
    %cst_7 = arith.constant 8.000000e+00 : f32
    %20 = vector.broadcast %cst_7 : f32 to vector<16x1xf32>
    %21 = arith.divf %19, %20 : vector<16x1xf32>
    %22 = vector.broadcast %21 : vector<16x1xf32> to vector<16x8xf32>
    %23 = arith.subf %15, %22 : vector<16x8xf32>
    %24 = arith.mulf %23, %23 : vector<16x8xf32>
    %cst_8 = arith.constant dense<0.000000e+00> : vector<16xf32>
    %25 = vector.multi_reduction <add>, %24, %cst_8 [1] : vector<16x8xf32> to vector<16xf32>
    %26 = vector.shape_cast %25 : vector<16xf32> to vector<16x1xf32>
    %cst_9 = arith.constant 8.000000e+00 : f32
    %27 = vector.broadcast %cst_9 : f32 to vector<16x1xf32>
    %28 = arith.divf %26, %27 : vector<16x1xf32>
    %29 = vector.broadcast %21 : vector<16x1xf32> to vector<16x8xf32>
    %30 = arith.subf %15, %29 : vector<16x8xf32>
    %cst_10 = arith.constant 9.99999974E-6 : f32
    %31 = vector.broadcast %cst_10 : f32 to vector<16x1xf32>
    %32 = arith.addf %28, %31 : vector<16x1xf32>
    %33 = math.rsqrt %32 : vector<16x1xf32>
    %34 = vector.broadcast %33 : vector<16x1xf32> to vector<16x8xf32>
    %35 = arith.mulf %30, %34 : vector<16x8xf32>
    %36 = vector.broadcast %1 : vector<1x8xf32> to vector<16x8xf32>
    %37 = arith.mulf %35, %36 : vector<16x8xf32>
    %38 = vector.broadcast %2 : vector<1x8xf32> to vector<16x8xf32>
    %39 = arith.addf %37, %38 : vector<16x8xf32>
    %c0_11 = arith.constant 0 : index
    %c0_12 = arith.constant 0 : index
    %40 = vector.load %arg3[%c0_11, %c0_12] : memref<8x128xf32, #tpu.memory_space<vmem>>, vector<8x128xf32>
    %cst_13 = arith.constant dense<0.000000e+00> : vector<16x128xf32>
    %41 = tpu.matmul %39, %40, %cst_13 {dimension_numbers = #tpu.dot_dimension_numbers<[1], [0], [0], [1], [0, 0, 1, 1], [], []>} : vector<16x8xf32>, vector<8x128xf32>, vector<16x128xf32> -> vector<16x128xf32>
    %42 = vector.broadcast %3 : vector<1x128xf32> to vector<16x128xf32>
    %43 = arith.addf %41, %42 : vector<16x128xf32>
    %44 = vector.shape_cast %43 : vector<16x128xf32> to vector<2x8x128xf32>
    %cst_14 = arith.constant dense<0.000000e+00> : vector<2x128xf32>
    %45 = vector.multi_reduction <add>, %44, %cst_14 [1] : vector<2x8x128xf32> to vector<2x128xf32>
    %46 = vector.shape_cast %45 : vector<2x128xf32> to vector<2x1x128xf32>
    %47 = vector.shape_cast %46 : vector<2x1x128xf32> to vector<2x1x128xf32>
    %48 = vector.broadcast %47 : vector<2x1x128xf32> to vector<2x8x128xf32>
    %49 = vector.shape_cast %48 : vector<2x8x128xf32> to vector<16x128xf32>
    %50 = vector.shape_cast %39 : vector<16x8xf32> to vector<2x8x8xf32>
    %c0_15 = arith.constant 0 : index
    %c0_16 = arith.constant 0 : index
    %c0_17 = arith.constant 0 : index
    %51 = vector.load %arg4[%c0_15, %c0_16, %c0_17] : memref<8x16x8xf32, #tpu.memory_space<vmem>>, vector<1x16x8xf32>
    %52 = vector.shape_cast %51 : vector<1x16x8xf32> to vector<16x8xf32>
    %53 = vector.shape_cast %52 : vector<16x8xf32> to vector<1x16x8xf32>
    %54 = vector.extract_strided_slice %50 {offsets = [0, 0, 0], sizes = [2, 1, 8], strides = [1, 1, 1]} : vector<2x8x8xf32> to vector<2x1x8xf32>
    %55 = vector.broadcast %53 : vector<1x16x8xf32> to vector<2x16x8xf32>
    %56 = vector.broadcast %54 : vector<2x1x8xf32> to vector<2x16x8xf32>
    %57 = arith.mulf %55, %56 : vector<2x16x8xf32>
    %c1 = arith.constant 1 : index
    %c0_18 = arith.constant 0 : index
    %c0_19 = arith.constant 0 : index
    %58 = vector.load %arg4[%c1, %c0_18, %c0_19] : memref<8x16x8xf32, #tpu.memory_space<vmem>>, vector<1x16x8xf32>
    %59 = vector.shape_cast %58 : vector<1x16x8xf32> to vector<16x8xf32>
    %60 = vector.shape_cast %59 : vector<16x8xf32> to vector<1x16x8xf32>
    %61 = vector.extract_strided_slice %50 {offsets = [0, 1, 0], sizes = [2, 1, 8], strides = [1, 1, 1]} : vector<2x8x8xf32> to vector<2x1x8xf32>
    %62 = vector.broadcast %60 : vector<1x16x8xf32> to vector<2x16x8xf32>
    %63 = vector.broadcast %61 : vector<2x1x8xf32> to vector<2x16x8xf32>
    %64 = arith.mulf %62, %63 : vector<2x16x8xf32>
    %c2 = arith.constant 2 : index
    %c0_20 = arith.constant 0 : index
    %c0_21 = arith.constant 0 : index
    %65 = vector.load %arg4[%c2, %c0_20, %c0_21] : memref<8x16x8xf32, #tpu.memory_space<vmem>>, vector<1x16x8xf32>
    %66 = vector.shape_cast %65 : vector<1x16x8xf32> to vector<16x8xf32>
    %67 = vector.shape_cast %66 : vector<16x8xf32> to vector<1x16x8xf32>
    %68 = vector.extract_strided_slice %50 {offsets = [0, 2, 0], sizes = [2, 1, 8], strides = [1, 1, 1]} : vector<2x8x8xf32> to vector<2x1x8xf32>
    %69 = vector.broadcast %67 : vector<1x16x8xf32> to vector<2x16x8xf32>
    %70 = vector.broadcast %68 : vector<2x1x8xf32> to vector<2x16x8xf32>
    %71 = arith.mulf %69, %70 : vector<2x16x8xf32>
    %c3 = arith.constant 3 : index
    %c0_22 = arith.constant 0 : index
    %c0_23 = arith.constant 0 : index
    %72 = vector.load %arg4[%c3, %c0_22, %c0_23] : memref<8x16x8xf32, #tpu.memory_space<vmem>>, vector<1x16x8xf32>
    %73 = vector.shape_cast %72 : vector<1x16x8xf32> to vector<16x8xf32>
    %74 = vector.shape_cast %73 : vector<16x8xf32> to vector<1x16x8xf32>
    %75 = vector.extract_strided_slice %50 {offsets = [0, 3, 0], sizes = [2, 1, 8], strides = [1, 1, 1]} : vector<2x8x8xf32> to vector<2x1x8xf32>
    %76 = vector.broadcast %74 : vector<1x16x8xf32> to vector<2x16x8xf32>
    %77 = vector.broadcast %75 : vector<2x1x8xf32> to vector<2x16x8xf32>
    %78 = arith.mulf %76, %77 : vector<2x16x8xf32>
    %c4 = arith.constant 4 : index
    %c0_24 = arith.constant 0 : index
    %c0_25 = arith.constant 0 : index
    %79 = vector.load %arg4[%c4, %c0_24, %c0_25] : memref<8x16x8xf32, #tpu.memory_space<vmem>>, vector<1x16x8xf32>
    %80 = vector.shape_cast %79 : vector<1x16x8xf32> to vector<16x8xf32>
    %81 = vector.shape_cast %80 : vector<16x8xf32> to vector<1x16x8xf32>
    %82 = vector.extract_strided_slice %50 {offsets = [0, 4, 0], sizes = [2, 1, 8], strides = [1, 1, 1]} : vector<2x8x8xf32> to vector<2x1x8xf32>
    %83 = vector.broadcast %81 : vector<1x16x8xf32> to vector<2x16x8xf32>
    %84 = vector.broadcast %82 : vector<2x1x8xf32> to vector<2x16x8xf32>
    %85 = arith.mulf %83, %84 : vector<2x16x8xf32>
    %c5 = arith.constant 5 : index
    %c0_26 = arith.constant 0 : index
    %c0_27 = arith.constant 0 : index
    %86 = vector.load %arg4[%c5, %c0_26, %c0_27] : memref<8x16x8xf32, #tpu.memory_space<vmem>>, vector<1x16x8xf32>
    %87 = vector.shape_cast %86 : vector<1x16x8xf32> to vector<16x8xf32>
    %88 = vector.shape_cast %87 : vector<16x8xf32> to vector<1x16x8xf32>
    %89 = vector.extract_strided_slice %50 {offsets = [0, 5, 0], sizes = [2, 1, 8], strides = [1, 1, 1]} : vector<2x8x8xf32> to vector<2x1x8xf32>
    %90 = vector.broadcast %88 : vector<1x16x8xf32> to vector<2x16x8xf32>
    %91 = vector.broadcast %89 : vector<2x1x8xf32> to vector<2x16x8xf32>
    %92 = arith.mulf %90, %91 : vector<2x16x8xf32>
    %c6 = arith.constant 6 : index
    %c0_28 = arith.constant 0 : index
    %c0_29 = arith.constant 0 : index
    %93 = vector.load %arg4[%c6, %c0_28, %c0_29] : memref<8x16x8xf32, #tpu.memory_space<vmem>>, vector<1x16x8xf32>
    %94 = vector.shape_cast %93 : vector<1x16x8xf32> to vector<16x8xf32>
    %95 = vector.shape_cast %94 : vector<16x8xf32> to vector<1x16x8xf32>
    %96 = vector.extract_strided_slice %50 {offsets = [0, 6, 0], sizes = [2, 1, 8], strides = [1, 1, 1]} : vector<2x8x8xf32> to vector<2x1x8xf32>
    %97 = vector.broadcast %95 : vector<1x16x8xf32> to vector<2x16x8xf32>
    %98 = vector.broadcast %96 : vector<2x1x8xf32> to vector<2x16x8xf32>
    %99 = arith.mulf %97, %98 : vector<2x16x8xf32>
    %c7 = arith.constant 7 : index
    %c0_30 = arith.constant 0 : index
    %c0_31 = arith.constant 0 : index
    %100 = vector.load %arg4[%c7, %c0_30, %c0_31] : memref<8x16x8xf32, #tpu.memory_space<vmem>>, vector<1x16x8xf32>
    %101 = vector.shape_cast %100 : vector<1x16x8xf32> to vector<16x8xf32>
    %102 = vector.shape_cast %101 : vector<16x8xf32> to vector<1x16x8xf32>
    %103 = vector.extract_strided_slice %50 {offsets = [0, 7, 0], sizes = [2, 1, 8], strides = [1, 1, 1]} : vector<2x8x8xf32> to vector<2x1x8xf32>
    %104 = vector.broadcast %102 : vector<1x16x8xf32> to vector<2x16x8xf32>
    %105 = vector.broadcast %103 : vector<2x1x8xf32> to vector<2x16x8xf32>
    %106 = arith.mulf %104, %105 : vector<2x16x8xf32>
    %c0_32 = arith.constant 0 : index
    %c0_33 = arith.constant 0 : index
    %107 = vector.load %arg5[%c0_32, %c0_33] : memref<16x8xf32, #tpu.memory_space<vmem>>, vector<16x8xf32>
    %108 = vector.shape_cast %107 : vector<16x8xf32> to vector<1x16x8xf32>
    %109 = arith.addf %57, %64 : vector<2x16x8xf32>
    %110 = arith.addf %71, %78 : vector<2x16x8xf32>
    %111 = arith.addf %109, %110 : vector<2x16x8xf32>
    %112 = arith.addf %85, %92 : vector<2x16x8xf32>
    %113 = arith.addf %99, %106 : vector<2x16x8xf32>
    %114 = arith.addf %112, %113 : vector<2x16x8xf32>
    %115 = arith.addf %111, %114 : vector<2x16x8xf32>
    %116 = vector.broadcast %108 : vector<1x16x8xf32> to vector<2x16x8xf32>
    %117 = arith.addf %116, %115 : vector<2x16x8xf32>
    %cst_34 = arith.constant dense<0.000000e+00> : vector<2x16xf32>
    %118 = vector.multi_reduction <add>, %117, %cst_34 [2] : vector<2x16x8xf32> to vector<2x16xf32>
    %119 = vector.shape_cast %118 : vector<2x16xf32> to vector<2x16x1xf32>
    %cst_35 = arith.constant 8.000000e+00 : f32
    %120 = vector.broadcast %cst_35 : f32 to vector<2x16x1xf32>
    %121 = arith.divf %119, %120 : vector<2x16x1xf32>
    %122 = vector.broadcast %121 : vector<2x16x1xf32> to vector<2x16x8xf32>
    %123 = arith.subf %117, %122 : vector<2x16x8xf32>
    %124 = arith.mulf %123, %123 : vector<2x16x8xf32>
    %cst_36 = arith.constant dense<0.000000e+00> : vector<2x16xf32>
    %125 = vector.multi_reduction <add>, %124, %cst_36 [2] : vector<2x16x8xf32> to vector<2x16xf32>
    %126 = vector.shape_cast %125 : vector<2x16xf32> to vector<2x16x1xf32>
    %cst_37 = arith.constant 8.000000e+00 : f32
    %127 = vector.broadcast %cst_37 : f32 to vector<2x16x1xf32>
    %128 = arith.divf %126, %127 : vector<2x16x1xf32>
    %129 = vector.broadcast %121 : vector<2x16x1xf32> to vector<2x16x8xf32>
    %130 = arith.subf %117, %129 : vector<2x16x8xf32>
    %cst_38 = arith.constant 9.99999974E-6 : f32
    %131 = vector.broadcast %cst_38 : f32 to vector<2x16x1xf32>
    %132 = arith.addf %128, %131 : vector<2x16x1xf32>
    %133 = math.rsqrt %132 : vector<2x16x1xf32>
    %134 = vector.broadcast %133 : vector<2x16x1xf32> to vector<2x16x8xf32>
    %135 = arith.mulf %130, %134 : vector<2x16x8xf32>
    %136 = vector.shape_cast %4 : vector<1x8xf32> to vector<1x1x8xf32>
    %137 = vector.broadcast %136 : vector<1x1x8xf32> to vector<2x16x8xf32>
    %138 = arith.mulf %135, %137 : vector<2x16x8xf32>
    %139 = vector.shape_cast %5 : vector<1x8xf32> to vector<1x1x8xf32>
    %140 = vector.broadcast %139 : vector<1x1x8xf32> to vector<2x16x8xf32>
    %141 = arith.addf %138, %140 : vector<2x16x8xf32>
    %142 = vector.extract_strided_slice %141 {offsets = [0, 0, 0], sizes = [2, 8, 8], strides = [1, 1, 1]} : vector<2x16x8xf32> to vector<2x8x8xf32>
    %143 = vector.shape_cast %142 : vector<2x8x8xf32> to vector<16x8xf32>
    %144 = vector.extract_strided_slice %141 {offsets = [0, 8, 0], sizes = [2, 8, 8], strides = [1, 1, 1]} : vector<2x16x8xf32> to vector<2x8x8xf32>
    %145 = vector.shape_cast %144 : vector<2x8x8xf32> to vector<16x8xf32>
    %c0_39 = arith.constant 0 : index
    %c0_40 = arith.constant 0 : index
    %146 = vector.load %arg6[%c0_39, %c0_40] : memref<128x16xbf16, #tpu.memory_space<vmem>>, vector<128x16xbf16>
    %147 = arith.truncf %143 : vector<16x8xf32> to vector<16x8xbf16>
    %cst_41 = arith.constant dense<0.000000e+00> : vector<128x8xf32>
    %148 = tpu.matmul %146, %147, %cst_41 {dimension_numbers = #tpu.dot_dimension_numbers<[1], [0], [0], [1], [0, 0, 1, 1], [], []>} : vector<128x16xbf16>, vector<16x8xbf16>, vector<128x8xf32> -> vector<128x8xf32>
    %c0_42 = arith.constant 0 : index
    %c0_43 = arith.constant 0 : index
    %149 = vector.load %arg7[%c0_42, %c0_43] : memref<128x16xbf16, #tpu.memory_space<vmem>>, vector<128x16xbf16>
    %150 = arith.truncf %145 : vector<16x8xf32> to vector<16x8xbf16>
    %cst_44 = arith.constant dense<0.000000e+00> : vector<128x8xf32>
    %151 = tpu.matmul %149, %150, %cst_44 {dimension_numbers = #tpu.dot_dimension_numbers<[1], [0], [0], [1], [0, 0, 1, 1], [], []>} : vector<128x16xbf16>, vector<16x8xbf16>, vector<128x8xf32> -> vector<128x8xf32>
    %152 = arith.truncf %148 : vector<128x8xf32> to vector<128x8xbf16>
    %c0_45 = arith.constant 0 : index
    %c0_46 = arith.constant 0 : index
    %153 = vector.load %arg8[%c0_45, %c0_46] : memref<8x64xbf16, #tpu.memory_space<vmem>>, vector<8x64xbf16>
    %cst_47 = arith.constant dense<0.000000e+00> : vector<128x64xf32>
    %154 = tpu.matmul %152, %153, %cst_47 {dimension_numbers = #tpu.dot_dimension_numbers<[1], [0], [0], [1], [0, 0, 1, 1], [], []>} : vector<128x8xbf16>, vector<8x64xbf16>, vector<128x64xf32> -> vector<128x64xf32>
    %155 = arith.truncf %151 : vector<128x8xf32> to vector<128x8xbf16>
    %c0_48 = arith.constant 0 : index
    %c0_49 = arith.constant 0 : index
    %156 = vector.load %arg9[%c0_48, %c0_49] : memref<8x64xbf16, #tpu.memory_space<vmem>>, vector<8x64xbf16>
    %cst_50 = arith.constant dense<0.000000e+00> : vector<128x64xf32>
    %157 = tpu.matmul %155, %156, %cst_50 {dimension_numbers = #tpu.dot_dimension_numbers<[1], [0], [0], [1], [0, 0, 1, 1], [], []>} : vector<128x8xbf16>, vector<8x64xbf16>, vector<128x64xf32> -> vector<128x64xf32>
    %158 = arith.mulf %154, %157 : vector<128x64xf32>
    %159 = arith.truncf %158 : vector<128x64xf32> to vector<128x64xbf16>
    %c0_51 = arith.constant 0 : index
    %c0_52 = arith.constant 0 : index
    %160 = vector.load %arg10[%c0_51, %c0_52] : memref<64x32xbf16, #tpu.memory_space<vmem>>, vector<64x32xbf16>
    %cst_53 = arith.constant dense<0.000000e+00> : vector<128x32xf32>
    %161 = tpu.matmul %159, %160, %cst_53 {dimension_numbers = #tpu.dot_dimension_numbers<[1], [0], [0], [1], [0, 0, 1, 1], [], []>} : vector<128x64xbf16>, vector<64x32xbf16>, vector<128x32xf32> -> vector<128x32xf32>
    %162 = vector.broadcast %6 : vector<1x32xf32> to vector<128x32xf32>
    %163 = arith.addf %161, %162 : vector<128x32xf32>
    %cst_54 = arith.constant 0.000000e+00 : f32
    %164 = vector.broadcast %cst_54 : f32 to vector<128x32xf32>
    %165 = arith.maximumf %163, %164 : vector<128x32xf32>
    %166 = vector.shape_cast %165 : vector<128x32xf32> to vector<16x8x32xf32>
    %167 = vector.broadcast %8 : vector<1x1x32xf32> to vector<16x8x32xf32>
    %168 = arith.mulf %166, %167 : vector<16x8x32xf32>
    %cst_55 = arith.constant dense<0.000000e+00> : vector<16x8xf32>
    %169 = vector.multi_reduction <add>, %168, %cst_55 [2] : vector<16x8x32xf32> to vector<16x8xf32>
    %170 = vector.broadcast %9 : vector<1x1xf32> to vector<16x8xf32>
    %171 = arith.addf %169, %170 : vector<16x8xf32>
    %cst_56 = arith.constant dense<0xFF800000> : vector<16xf32>
    %172 = vector.multi_reduction <maximumf>, %171, %cst_56 [1] : vector<16x8xf32> to vector<16xf32>
    %173 = vector.shape_cast %172 : vector<16xf32> to vector<16x1xf32>
    %174 = vector.broadcast %173 : vector<16x1xf32> to vector<16x8xf32>
    %175 = arith.subf %171, %174 : vector<16x8xf32>
    %176 = math.exp %175 : vector<16x8xf32>
    %cst_57 = arith.constant dense<0.000000e+00> : vector<16xf32>
    %177 = vector.multi_reduction <add>, %176, %cst_57 [1] : vector<16x8xf32> to vector<16xf32>
    %178 = vector.shape_cast %177 : vector<16xf32> to vector<16x1xf32>
    %179 = vector.broadcast %178 : vector<16x1xf32> to vector<16x8xf32>
    %180 = arith.divf %176, %179 : vector<16x8xf32>
    %cst_58 = arith.constant dense<0.000000e+00> : vector<16xf32>
    %181 = vector.multi_reduction <add>, %180, %cst_58 [1] : vector<16x8xf32> to vector<16xf32>
    %182 = vector.shape_cast %181 : vector<16xf32> to vector<16x1xf32>
    %183 = vector.broadcast %182 : vector<16x1xf32> to vector<16x128xf32>
    %184 = arith.mulf %183, %49 : vector<16x128xf32>
    %185 = arith.addf %17, %184 : vector<16x128xf32>
    %c0_59 = arith.constant 0 : index
    %c0_60 = arith.constant 0 : index
    %186 = vector.load %arg12[%c0_59, %c0_60] : memref<128x32xf32, #tpu.memory_space<vmem>>, vector<128x32xf32>
    %cst_61 = arith.constant dense<0.000000e+00> : vector<16x32xf32>
    %187 = tpu.matmul %185, %186, %cst_61 {dimension_numbers = #tpu.dot_dimension_numbers<[1], [0], [0], [1], [0, 0, 1, 1], [], []>} : vector<16x128xf32>, vector<128x32xf32>, vector<16x32xf32> -> vector<16x32xf32>
    %188 = vector.broadcast %10 : vector<1x32xf32> to vector<16x32xf32>
    %189 = arith.addf %187, %188 : vector<16x32xf32>
    %cst_62 = arith.constant 0.000000e+00 : f32
    %190 = vector.broadcast %cst_62 : f32 to vector<16x32xf32>
    %191 = arith.maximumf %189, %190 : vector<16x32xf32>
    %c0_63 = arith.constant 0 : index
    %c0_64 = arith.constant 0 : index
    %192 = vector.load %arg13[%c0_63, %c0_64] : memref<32x128xf32, #tpu.memory_space<vmem>>, vector<32x128xf32>
    %cst_65 = arith.constant dense<0.000000e+00> : vector<16x128xf32>
    %193 = tpu.matmul %191, %192, %cst_65 {dimension_numbers = #tpu.dot_dimension_numbers<[1], [0], [0], [1], [0, 0, 1, 1], [], []>} : vector<16x32xf32>, vector<32x128xf32>, vector<16x128xf32> -> vector<16x128xf32>
    %194 = vector.broadcast %11 : vector<1x128xf32> to vector<16x128xf32>
    %195 = arith.addf %193, %194 : vector<16x128xf32>
    %196 = arith.addf %185, %195 : vector<16x128xf32>
    %cst_66 = arith.constant dense<0.000000e+00> : vector<16xf32>
    %197 = vector.multi_reduction <add>, %196, %cst_66 [1] : vector<16x128xf32> to vector<16xf32>
    %198 = vector.shape_cast %197 : vector<16xf32> to vector<16x1xf32>
    %cst_67 = arith.constant 1.280000e+02 : f32
    %199 = vector.broadcast %cst_67 : f32 to vector<16x1xf32>
    %200 = arith.divf %198, %199 : vector<16x1xf32>
    %201 = vector.broadcast %200 : vector<16x1xf32> to vector<16x128xf32>
    %202 = arith.subf %196, %201 : vector<16x128xf32>
    %203 = arith.mulf %202, %202 : vector<16x128xf32>
    %cst_68 = arith.constant dense<0.000000e+00> : vector<16xf32>
    %204 = vector.multi_reduction <add>, %203, %cst_68 [1] : vector<16x128xf32> to vector<16xf32>
    %205 = vector.shape_cast %204 : vector<16xf32> to vector<16x1xf32>
    %cst_69 = arith.constant 1.280000e+02 : f32
    %206 = vector.broadcast %cst_69 : f32 to vector<16x1xf32>
    %207 = arith.divf %205, %206 : vector<16x1xf32>
    %208 = vector.broadcast %200 : vector<16x1xf32> to vector<16x128xf32>
    %209 = arith.subf %196, %208 : vector<16x128xf32>
    %cst_70 = arith.constant 9.99999974E-6 : f32
    %210 = vector.broadcast %cst_70 : f32 to vector<16x1xf32>
    %211 = arith.addf %207, %210 : vector<16x1xf32>
    %212 = math.rsqrt %211 : vector<16x1xf32>
    %213 = vector.broadcast %212 : vector<16x1xf32> to vector<16x128xf32>
    %214 = arith.mulf %209, %213 : vector<16x128xf32>
    %215 = vector.broadcast %12 : vector<1x128xf32> to vector<16x128xf32>
    %216 = arith.mulf %214, %215 : vector<16x128xf32>
    %217 = vector.broadcast %13 : vector<1x128xf32> to vector<16x128xf32>
    %218 = arith.addf %216, %217 : vector<16x128xf32>
    %219 = vector.shape_cast %218 : vector<16x128xf32> to vector<2x8x128xf32>
    %c0_71 = arith.constant 0 : index
    %c0_72 = arith.constant 0 : index
    %c0_73 = arith.constant 0 : index
    %220 = vector.load %arg14[%c0_71, %c0_72, %c0_73] : memref<2x8x128xf32, #tpu.memory_space<vmem>>, vector<2x8x128xf32>
    tpu.vector_store %arg14[%c0_71, %c0_72, %c0_73], %219 {strides = array<i32>} : memref<2x8x128xf32, #tpu.memory_space<vmem>>, vector<2x8x128xf32>,
    return
  }
  func.func @transform_0(%arg0: i32) -> (i32, i32, i32) {
    %c0_i32 = arith.constant 0 : i32
    %c0_i32_0 = arith.constant 0 : i32
    %c0_i32_1 = arith.constant 0 : i32
    return %arg0, %c0_i32, %c0_i32_0 : i32, i32, i32
  }
  func.func @transform_1(%arg0: i32) -> (i32, i32) {
    %c0_i32 = arith.constant 0 : i32
    %c0_i32_0 = arith.constant 0 : i32
    %c0_i32_1 = arith.constant 0 : i32
    return %c0_i32, %c0_i32_0 : i32, i32
  }
  func.func @transform_2(%arg0: i32) -> (i32, i32) {
    %c0_i32 = arith.constant 0 : i32
    %c0_i32_0 = arith.constant 0 : i32
    %c0_i32_1 = arith.constant 0 : i32
    return %c0_i32, %c0_i32_0 : i32, i32
  }
  func.func @transform_3(%arg0: i32) -> (i32, i32, i32) {
    %c0_i32 = arith.constant 0 : i32
    %c0_i32_0 = arith.constant 0 : i32
    %c0_i32_1 = arith.constant 0 : i32
    %c0_i32_2 = arith.constant 0 : i32
    return %c0_i32, %c0_i32_0, %c0_i32_1 : i32, i32, i32
  }
  func.func @transform_4(%arg0: i32) -> (i32, i32) {
    %c0_i32 = arith.constant 0 : i32
    %c0_i32_0 = arith.constant 0 : i32
    %c0_i32_1 = arith.constant 0 : i32
    return %c0_i32, %c0_i32_0 : i32, i32
  }
  func.func @transform_5(%arg0: i32) -> (i32, i32) {
    %c0_i32 = arith.constant 0 : i32
    %c0_i32_0 = arith.constant 0 : i32
    %c0_i32_1 = arith.constant 0 : i32
    return %c0_i32, %c0_i32_0 : i32, i32
  }
  func.func @transform_6(%arg0: i32) -> (i32, i32) {
    %c0_i32 = arith.constant 0 : i32
    %c0_i32_0 = arith.constant 0 : i32
    %c0_i32_1 = arith.constant 0 : i32
    return %c0_i32, %c0_i32_0 : i32, i32
  }
  func.func @transform_7(%arg0: i32) -> (i32, i32) {
    %c0_i32 = arith.constant 0 : i32
    %c0_i32_0 = arith.constant 0 : i32
    %c0_i32_1 = arith.constant 0 : i32
    return %c0_i32, %c0_i32_0 : i32, i32
  }
  func.func @transform_8(%arg0: i32) -> (i32, i32) {
    %c0_i32 = arith.constant 0 : i32
    %c0_i32_0 = arith.constant 0 : i32
    %c0_i32_1 = arith.constant 0 : i32
    return %c0_i32, %c0_i32_0 : i32, i32
  }
  func.func @transform_9(%arg0: i32) -> (i32, i32) {
    %c0_i32 = arith.constant 0 : i32
    %c0_i32_0 = arith.constant 0 : i32
    %c0_i32_1 = arith.constant 0 : i32
    return %c0_i32, %c0_i32_0 : i32, i32
  }
  func.func @transform_10(%arg0: i32) -> (i32, i32) {
    %c0_i32 = arith.constant 0 : i32
    %c0_i32_0 = arith.constant 0 : i32
    %c0_i32_1 = arith.constant 0 : i32
    return %c0_i32, %c0_i32_0 : i32, i32
  }
  func.func @transform_11(%arg0: i32) -> (i32, i32) {
    %c0_i32 = arith.constant 0 : i32
    %c0_i32_0 = arith.constant 0 : i32
    %c0_i32_1 = arith.constant 0 : i32
    return %c0_i32, %c0_i32_0 : i32, i32
  }
  func.func @transform_12(%arg0: i32) -> (i32, i32) {
    %c0_i32 = arith.constant 0 : i32
    %c0_i32_0 = arith.constant 0 : i32
    %c0_i32_1 = arith.constant 0 : i32
    return %c0_i32, %c0_i32_0 : i32, i32
  }
  func.func @transform_13(%arg0: i32) -> (i32, i32, i32) {
    %c0_i32 = arith.constant 0 : i32
    %c0_i32_0 = arith.constant 0 : i32
    %c0_i32_1 = arith.constant 0 : i32
    return %arg0, %c0_i32, %c0_i32_0 : i32, i32, i32
  }
}

</mosaic_0001>

<bundles_post_ra>
// kernel: tpu_custom_call.1
= control target key start
LH: loop header
LB: loop body
LE: loop exit
PB: predicated region body
PF: predicated region fallthrough
CT: control target
= control target key end

     0   :  { %vm3102_vm0 = vcmask 64512   ;;  %s3085_s0 = inlined_call_operand.vmem [shape: f32[2,8,8], index: 0, kind: input, shape index: {}]   ;;  %s3086_s1 = inlined_call_operand.vmem [shape: f32[16,128], index: 1, kind: input, shape index: {}]   ;;  %s3087_s2 = inlined_call_operand.vmem [shape: f32[8,128], index: 2, kind: input, shape index: {}]   ;;  %s3088_s3 = inlined_call_operand.vmem [shape: f32[8,16,8], index: 3, kind: input, shape index: {}]   ;;  %s3089_s4 = inlined_call_operand.vmem [shape: f32[16,8], index: 4, kind: input, shape index: {}]   ;;  %s3090_s5 = inlined_call_operand.vmem [shape: bf16[128,16], index: 5, kind: input, shape index: {}]   ;;  %s3091_s6 = inlined_call_operand.vmem [shape: bf16[128,16], index: 6, kind: input, shape index: {}]   ;;  %s3092_s7 = inlined_call_operand.vmem [shape: bf16[8,64], index: 7, kind: input, shape index: {}]   ;;  %s3093_s8 = inlined_call_operand.vmem [shape: bf16[8,64], index: 8, kind: input, shape index: {}]   ;;  %s3094_s9 = inlined_call_operand.vmem [shape: bf16[64,32], index: 9, kind: input, shape index: {}]   ;;  %s3095_s10 = inlined_call_operand.vmem [shape: f32[8,128], index: 10, kind: input, shape index: {}]   ;;  %s3096_s11 = inlined_call_operand.vmem [shape: f32[128,32], index: 11, kind: input, shape index: {}]   ;;  %s3097_s12 = inlined_call_operand.vmem [shape: f32[32,128], index: 12, kind: input, shape index: {}]   ;;  %s3098_s13 = inlined_call_operand.hbm [shape: f32[2,8,128], index: 13, kind: output, shape index: {}]  }
   0x1   :  { %v48_v0 = vld [vmem:[%s3085_s0] sm:$0xff] }
   0x2   :  { %18 = vsyncpa [#allocation3], 0  ;;  %v52_v1 = vsel %vm3102_vm0, %v48_v0, 0.0  ;;  %v49_v2 = vld [vmem:[%s3085_s0 + $0x8] sm:$0xff]  ;;  %v2113_v4 = vmov 8.0   ;;  %v109_v21 = vld [vmem:[%s3087_s2] sm:$0xff] }
   0x3   :  { %53 = vadd.xlane.f32.xlu0 %v52_v1  ;;  %v55_v3 = vsel %vm3102_vm0, %v49_v2, 0.0  ;;  %2000 = vrcp.f32 %v2113_v4  ;;  %132 = vmatpush.msra.mxu0 %v109_v21  ;;  %v2211_v32 = vld [vmem:[%s3086_s1] sm:$0xff]  ;;  %v2218_v46 = vld [vmem:[%s3088_s3 + $0x8] sm:$0xff]  ;;  %v2223_v47 = vld [vmem:[%s3088_s3 + $0x18] sm:$0xff]  ;;  %s1814_s30 = sshll.u32 %s3098_s13, 4  ;;  %s2117_s14 = smov 128   ;;  %s1815_s30 = int_to_ptr.hbm [resolvable:$true] %s1814_s30 }
   0x4   :  { %v103_v37 = vperm.slane %v2211_v32, 0  ;;  %v106_v41 = vperm.slane %v2211_v32, 1  ;;  %v2228_v49 = vld [vmem:[%s3088_s3 + $0x28] sm:$0xff]  ;;  %v2233_v50 = vld [vmem:[%s3088_s3 + $0x38] sm:$0xff]  ;;  %v2254_v62 = vld [vmem:[%s3088_s3] sm:$0xff] }
   0x5   :  { %v2238_v51 = vld [vmem:[%s3088_s3 + $0x48] sm:$0xff]  ;;  %v2244_v56 = vld [vmem:[%s3088_s3 + $0x58] sm:$0xff]  ;;  %v2265_v4 = vld [vmem:[%s3088_s3 + $0x20] sm:$0xff] }
   0x6   :  { %v2249_v57 = vld [vmem:[%s3088_s3 + $0x68] sm:$0xff] }
   0x9   :  { %v2001_v5 = vpop.eup %2000 }
   0xa   :  { %v59_v6 = vmul.f32 8.0, %v2001_v5  ;;  %vm63_vm1 = vweird.f32 %v2001_v5 }
   0xb   :  { %56 = vadd.xlane.f32.xlu0 %v55_v3  ;;  %v1828_v3 = vld [vmem:[%s3088_s3 + $0x10] sm:$0xff] }
   0xc   :  { %v60_v7 = vsub.f32 1.0, %v59_v6 }
   0xe   :  { %v61_v8 = vmul.f32 %v2001_v5, %v60_v7 }
  0x10   :  { %v62_v9 = vadd.f32 %v2001_v5, %v61_v8 }
  0x12   :  { %v2197_v10 = vsel %vm63_vm1, %v2001_v5, %v62_v9  ;;  %v1841_v9 = vld [vmem:[%s3088_s3 + $0x78] sm:$0xff] }
  0x76   :  { %v54_v11 = vpop.xlane.xlu0 %53 }
  0x77   :  { %v65_v12 = vmul.f32 %v2197_v10, %v54_v11  ;;  %v2277_v11 = vld [vmem:[%s3088_s3 + $0x30] sm:$0xff] }
  0x79   :  { %v67_v13 = vsub.f32 %v48_v0, %v65_v12  ;;  %v2282_v12 = vld [vmem:[%s3088_s3 + $0x40] sm:$0xff] }
  0x7b   :  { %v69_v14 = vmul.f32 %v67_v13, %v67_v13 }
  0x7d   :  { %v71_v15 = vsel %vm3102_vm0, %v69_v14, 0.0 }
  0x7e   :  { %72 = vadd.xlane.f32.xlu1 %v71_v15  ;;  %v57_v16 = vpop.xlane.xlu0 %56 }
  0x7f   :  { %v66_v17 = vmul.f32 %v2197_v10, %v57_v16 }
  0x81   :  { %v68_v18 = vsub.f32 %v49_v2, %v66_v17  ;;  %v1836_v17 = vld [vmem:[%s3088_s3 + $0x50] sm:$0xff] }
  0x83   :  { %v70_v19 = vmul.f32 %v68_v18, %v68_v18 }
  0x85   :  { %v74_v20 = vsel %vm3102_vm0, %v70_v19, 0.0  ;;  %v1840_v19 = vld [vmem:[%s3088_s3 + $0x70] sm:$0xff] }
  0x86   :  { %75 = vadd.xlane.f32.xlu1 %v74_v20 }
  0xf1   :  { %v73_v22 = vpop.xlane.xlu1 %72 }
  0xf2   :  { %v77_v23 = vmul.f32 %v73_v22, %v2197_v10 }
  0xf4   :  { %v79_v24 = vadd.f32 1e-05, %v77_v23 }
  0xf6   :  { %2002 = vrsqrt.f32 %v79_v24  ;;  %vm87_vm3 = vweird.f32 %v79_v24 }
  0xf9   :  { %v76_v25 = vpop.xlane.xlu1 %75 }
  0xfa   :  { %v78_v26 = vmul.f32 %v76_v25, %v2197_v10 }
  0xfc   :  { %v2003_v27 = vpop.eup %2002  ;;  %v80_v28 = vadd.f32 1e-05, %v78_v26 }
  0xfd   :  { %v82_v29 = vmul.f32 %v2003_v27, %v79_v24  ;;  %vm88_vm2 = vweird.f32 %v2003_v27 }
  0xfe   :  { %2004 = vrsqrt.f32 %v80_v28  ;;  %vm89_vm4 = vmor %vm87_vm3, %vm88_vm2  ;;  %vm97_vm6 = vweird.f32 %v80_v28 }
  0xff   :  { %v83_v30 = vmul.f32 %v2003_v27, %v82_v29 }
 0x101   :  { %v84_v31 = vmul.f32 0.5, %v83_v30 }
 0x103   :  { %v85_v33 = vsub.f32 1.5, %v84_v31 }
 0x104   :  { %v2005_v34 = vpop.eup %2004 }
 0x105   :  { %v86_v35 = vmul.f32 %v2003_v27, %v85_v33  ;;  %v92_v36 = vmul.f32 %v2005_v34, %v80_v28  ;;  %vm98_vm5 = vweird.f32 %v2005_v34 }
 0x106   :  { %vm99_vm7 = vmor %vm97_vm6, %vm98_vm5  ;;  %vm412_vm5 = vcmask 130048   ;;  %vm649_vm6 = vcmask 1043456  }
 0x107   :  { %v90_v38 = vsel %vm89_vm4, %v2003_v27, %v86_v35  ;;  %v93_v39 = vmul.f32 %v2005_v34, %v92_v36 }
 0x108   :  { %v101_v40 = vmul.f32 %v90_v38, %v67_v13 }
 0x109   :  { %v94_v42 = vmul.f32 0.5, %v93_v39 }
 0x10a   :  { %v104_v43 = vmul.f32 %v103_v37, %v101_v40 }
 0x10b   :  { %v95_v44 = vsub.f32 1.5, %v94_v42 }
 0x10c   :  { %v107_v45 = vadd.f32 %v106_v41, %v104_v43 }
 0x10d   :  { %v96_v48 = vmul.f32 %v2005_v34, %v95_v44 }
 0x10e   :  { %1826 = vmatmul.msk.f32.vlgmr.msra.gmra.mxu0 %vm3102_vm0, %v107_v45  ;;  %v154_v52 = vperm.slane %v107_v45, 0  ;;  %v163_v53 = vperm.slane %v107_v45, 1  ;;  %v172_v54 = vperm.slane %v107_v45, 2  ;;  %v181_v55 = vperm.slane %v107_v45, 3 }
 0x10f   :  { %v100_v58 = vsel %vm99_vm7, %v2005_v34, %v96_v48  ;;  %v190_v59 = vperm.slane %v107_v45, 4  ;;  %v199_v60 = vperm.slane %v107_v45, 5  ;;  %v208_v61 = vperm.slane %v107_v45, 6 }
 0x110   :  { %v102_v63 = vmul.f32 %v100_v58, %v68_v18  ;;  %v157_v0 = vmul.f32 %v154_v52, %v2218_v46  ;;  %v166_v1 = vmul.f32 %v2223_v47, %v163_v53  ;;  %v175_v2 = vmul.f32 %v2228_v49, %v172_v54  ;;  %v1838_v18 = vld [vmem:[%s3088_s3 + $0x60] sm:$0xff] }
 0x111   :  { %v184_v5 = vmul.f32 %v2233_v50, %v181_v55  ;;  %v193_v6 = vmul.f32 %v2238_v51, %v190_v59  ;;  %v202_v7 = vmul.f32 %v2244_v56, %v199_v60  ;;  %v211_v8 = vmul.f32 %v2249_v57, %v208_v61  ;;  %v223_v58 = vld [vmem:[%s3089_s4] sm:$0xff] }
 0x112   :  { %v105_v13 = vmul.f32 %v103_v37, %v102_v63  ;;  %v217_v14 = vperm.slane %v107_v45, 7  ;;  %v226_v15 = vadd.f32 %v166_v1, %v157_v0  ;;  %v156_v16 = vmul.f32 %v154_v52, %v2254_v62  ;;  %v224_v45 = vld [vmem:[%s3089_s4 + $0x8] sm:$0xff] }
 0x113   :  { %v230_v20 = vadd.f32 %v184_v5, %v175_v2  ;;  %v238_v21 = vadd.f32 %v202_v7, %v193_v6  ;;  %v165_v22 = vmul.f32 %v1828_v3, %v163_v53  ;;  %v174_v23 = vmul.f32 %v2265_v4, %v172_v54 }
 0x114   :  { %v108_v24 = vadd.f32 %v106_v41, %v105_v13  ;;  %v220_v25 = vmul.f32 %v1841_v9, %v217_v14  ;;  %v183_v26 = vmul.f32 %v2277_v11, %v181_v55  ;;  %v192_v27 = vmul.f32 %v2282_v12, %v190_v59 }
 0x115   :  { %v234_v28 = vadd.f32 %v230_v20, %v226_v15  ;;  %v201_v29 = vmul.f32 %v1836_v17, %v199_v60  ;;  %v210_v30 = vmul.f32 %v1838_v18, %v208_v61  ;;  %v219_v31 = vmul.f32 %v1840_v19, %v217_v14 }
 0x116   :  { %1827 = vmatmul.msk.f32.gmra.mxu0 %vm3102_vm0, %v108_v24  ;;  %v242_v33 = vadd.f32 %v220_v25, %v211_v8  ;;  %v225_v34 = vadd.f32 %v165_v22, %v156_v16  ;;  %v229_v35 = vadd.f32 %v183_v26, %v174_v23  ;;  %v155_v36 = vperm.slane %v108_v24, 0 }
 0x117   :  { %v237_v37 = vadd.f32 %v201_v29, %v192_v27  ;;  %v241_v38 = vadd.f32 %v219_v31, %v210_v30  ;;  %v164_v39 = vperm.slane %v108_v24, 1  ;;  %v173_v40 = vperm.slane %v108_v24, 2 }
 0x118   :  { %v246_v41 = vadd.f32 %v242_v33, %v238_v21  ;;  %v233_v42 = vadd.f32 %v229_v35, %v225_v34  ;;  %v159_v43 = vmul.f32 %v155_v36, %v2218_v46  ;;  %v182_v44 = vperm.slane %v108_v24, 3 }
 0x119   :  { %v245_v48 = vadd.f32 %v241_v38, %v237_v37  ;;  %v168_v52 = vmul.f32 %v2223_v47, %v164_v39  ;;  %v177_v53 = vmul.f32 %v2228_v49, %v173_v40  ;;  %v191_v54 = vperm.slane %v108_v24, 4 }
 0x11a   :  { %v250_v55 = vadd.f32 %v246_v41, %v234_v28  ;;  %v186_v59 = vmul.f32 %v2233_v50, %v182_v44  ;;  %v200_v60 = vperm.slane %v108_v24, 5  ;;  %v209_v46 = vperm.slane %v108_v24, 6 }
 0x11b   :  { %v249_v61 = vadd.f32 %v245_v48, %v233_v42  ;;  %v195_v63 = vmul.f32 %v2238_v51, %v191_v54  ;;  %v218_v0 = vperm.slane %v108_v24, 7  ;;  %v228_v1 = vadd.f32 %v168_v52, %v159_v43 }
 0x11c   :  { %v254_v2 = vadd.f32 %v250_v55, %v224_v45  ;;  %v204_v47 = vmul.f32 %v2244_v56, %v200_v60  ;;  %v213_v49 = vmul.f32 %v2249_v57, %v209_v46  ;;  %v232_v5 = vadd.f32 %v186_v59, %v177_v53 }
 0x11d   :  { %v253_v6 = vadd.f32 %v249_v61, %v223_v58  ;;  %v222_v7 = vmul.f32 %v1841_v9, %v218_v0  ;;  %v158_v8 = vmul.f32 %v155_v36, %v2254_v62  ;;  %v167_v13 = vmul.f32 %v1828_v3, %v164_v39 }
 0x11e   :  { %v260_v50 = vsel %vm3102_vm0, %v254_v2, 0.0  ;;  %v236_v14 = vadd.f32 %v232_v5, %v228_v1  ;;  %v240_v15 = vadd.f32 %v204_v47, %v195_v63  ;;  %v176_v16 = vmul.f32 %v2265_v4, %v173_v40 }
 0x11f   :  { %261 = vadd.xlane.f32.xlu0 %v260_v50  ;;  %v257_v51 = vsel %vm3102_vm0, %v253_v6, 0.0  ;;  %v244_v20 = vadd.f32 %v222_v7, %v213_v49  ;;  %v185_v56 = vmul.f32 %v2277_v11, %v182_v44  ;;  %v194_v57 = vmul.f32 %v2282_v12, %v191_v54 }
 0x120   :  { %258 = vadd.xlane.f32.xlu2 %v257_v51  ;;  %v203_v21 = vmul.f32 %v1836_v17, %v200_v60  ;;  %v212_v9 = vmul.f32 %v1838_v18, %v209_v46  ;;  %v221_v22 = vmul.f32 %v1840_v19, %v218_v0  ;;  %v227_v62 = vadd.f32 %v167_v13, %v158_v8 }
 0x121   :  { %v248_v3 = vadd.f32 %v244_v20, %v240_v15  ;;  %v231_v23 = vadd.f32 %v185_v56, %v176_v16  ;;  %vm844_vm7 = vcmask 523264  }
 0x122   :  { %v239_v24 = vadd.f32 %v203_v21, %v194_v57  ;;  %v243_v25 = vadd.f32 %v221_v22, %v212_v9 }
 0x123   :  { %v252_v26 = vadd.f32 %v248_v3, %v236_v14  ;;  %v235_v27 = vadd.f32 %v231_v23, %v227_v62 }
 0x124   :  { %v247_v4 = vadd.f32 %v243_v25, %v239_v24 }
 0x125   :  { %v256_v28 = vadd.f32 %v252_v26, %v224_v45 }
 0x126   :  { %v251_v29 = vadd.f32 %v247_v4, %v235_v27 }
 0x127   :  { %v266_v30 = vsel %vm3102_vm0, %v256_v28, 0.0 }
 0x128   :  { %267 = vadd.xlane.f32.xlu1 %v266_v30  ;;  %v255_v11 = vadd.f32 %v251_v29, %v223_v58  ;;  %v345_v29 = vperm.slane %v2211_v32, 3 }
 0x12a   :  { %v263_v12 = vsel %vm3102_vm0, %v255_v11, 0.0 }
 0x12b   :  { %264 = vadd.xlane.f32.xlu2 %v263_v12 }
 0x192   :  { %v262_v17 = vpop.xlane.xlu0 %261 }
 0x193   :  { %v270_v18 = vmul.f32 %v262_v17, %v2197_v10  ;;  %v259_v19 = vpop.xlane.xlu2 %258 }
 0x194   :  { %v269_v31 = vmul.f32 %v259_v19, %v2197_v10 }
 0x195   :  { %v2321_v33 = vsub.f32 %v254_v2, %v270_v18 }
 0x196   :  { %v2323_v34 = vsub.f32 %v253_v6, %v269_v31 }
 0x197   :  { %v278_v35 = vmul.f32 %v2321_v33, %v2321_v33 }
 0x198   :  { %v277_v36 = vmul.f32 %v2323_v34, %v2323_v34 }
 0x199   :  { %v284_v37 = vsel %vm3102_vm0, %v278_v35, 0.0 }
 0x19a   :  { %285 = vadd.xlane.f32.xlu1 %v284_v37  ;;  %v281_v38 = vsel %vm3102_vm0, %v277_v36, 0.0  ;;  %v350_v36 = vperm.slane %v2211_v32, 4 }
 0x19b   :  { %v268_v39 = vpop.xlane.xlu1 %267  ;;  %282 = vadd.xlane.f32.xlu2 %v281_v38 }
 0x19c   :  { %v272_v40 = vmul.f32 %v268_v39, %v2197_v10 }
 0x19e   :  { %v2332_v41 = vsub.f32 %v256_v28, %v272_v40  ;;  %v265_v42 = vpop.xlane.xlu2 %264 }
 0x19f   :  { %v271_v43 = vmul.f32 %v265_v42, %v2197_v10 }
 0x1a0   :  { %v280_v44 = vmul.f32 %v2332_v41, %v2332_v41 }
 0x1a1   :  { %v2337_v45 = vsub.f32 %v255_v11, %v271_v43 }
 0x1a2   :  { %v290_v48 = vsel %vm3102_vm0, %v280_v44, 0.0  ;;  %v1967_v44 = vld [vmem:[%s3090_s5 + $0x8] sm:$0xff] }
 0x1a3   :  { %291 = vadd.xlane.f32.xlu2 %v290_v48  ;;  %v279_v52 = vmul.f32 %v2337_v45, %v2337_v45  ;;  %v1968_v48 = vld [vmem:[%s3090_s5 + $0x10] sm:$0xff] }
 0x1a5   :  { %v287_v53 = vsel %vm3102_vm0, %v279_v52, 0.0  ;;  %v1971_v52 = vld [vmem:[%s3090_s5 + $0x28] sm:$0xff] }
 0x1a6   :  { %288 = vadd.xlane.f32.xlu0 %v287_v53  ;;  %v1969_v53 = vld [vmem:[%s3090_s5 + $0x18] sm:$0xff] }
 0x20d   :  { %v286_v54 = vpop.xlane.xlu1 %285 }
 0x20e   :  { %v294_v55 = vmul.f32 %v286_v54, %v2197_v10  ;;  %v283_v58 = vpop.xlane.xlu2 %282  ;;  %v1974_v54 = vld [vmem:[%s3091_s6] sm:$0xff] }
 0x20f   :  { %v293_v59 = vmul.f32 %v283_v58, %v2197_v10  ;;  %v1976_v58 = vld [vmem:[%s3091_s6 + $0x10] sm:$0xff] }
 0x210   :  { %v298_v60 = vadd.f32 1e-05, %v294_v55  ;;  %v1975_v55 = vld [vmem:[%s3091_s6 + $0x8] sm:$0xff] }
 0x211   :  { %v297_v46 = vadd.f32 1e-05, %v293_v59  ;;  %v1972_v59 = vld [vmem:[%s3090_s5 + $0x30] sm:$0xff] }
 0x212   :  { %2006 = vrsqrt.f32 %v298_v60  ;;  %vm317_vm10 = vweird.f32 %v298_v60 }
 0x213   :  { %2008 = vrsqrt.f32 %v297_v46  ;;  %vm307_vm12 = vweird.f32 %v297_v46 }
 0x216   :  { %v292_v61 = vpop.xlane.xlu2 %291 }
 0x217   :  { %v296_v63 = vmul.f32 %v292_v61, %v2197_v10  ;;  %v1978_v61 = vld [vmem:[%s3091_s6 + $0x20] sm:$0xff] }
 0x218   :  { %v2007_v0 = vpop.eup %2006 }
 0x219   :  { %v2009_v1 = vpop.eup %2008  ;;  %v312_v2 = vmul.f32 %v2007_v0, %v298_v60  ;;  %v289_v47 = vpop.xlane.xlu0 %288  ;;  %v300_v49 = vadd.f32 1e-05, %v296_v63  ;;  %vm318_vm8 = vweird.f32 %v2007_v0  ;;  %v1977_v60 = vld [vmem:[%s3091_s6 + $0x18] sm:$0xff]  ;;  %v624_v63 = vld [vmem:[%s3092_s7] sm:$0xf] }
 0x21a   :  { %v302_v5 = vmul.f32 %v2009_v1, %v297_v46  ;;  %v295_v6 = vmul.f32 %v289_v47, %v2197_v10  ;;  %vm308_vm9 = vweird.f32 %v2009_v1  ;;  %vm2347_vm11 = vmor %vm317_vm10, %vm318_vm8  ;;  %v1973_v46 = vld [vmem:[%s3090_s5 + $0x38] sm:$0xff]  ;;  %v2417_v47 = vpop.f32.mrf.mxu0  ;;  %vm3099_vm8 = vcmask 261120  }
 0x21b   :  { %v313_v7 = vmul.f32 %v2007_v0, %v312_v2  ;;  %2010 = vrsqrt.f32 %v300_v49  ;;  %vm309_vm13 = vmor %vm307_vm12, %vm308_vm9  ;;  %vm337_vm15 = vweird.f32 %v300_v49  ;;  %vm1055_vm9 = vcmask 1041409  }
 0x21c   :  { %v303_v8 = vmul.f32 %v2009_v1, %v302_v5  ;;  %v299_v13 = vadd.f32 1e-05, %v295_v6  ;;  %vm3106_vm10 = vcmask 1042434   ;;  %vm3104_vm12 = vcmask 1044484  }
 0x21d   :  { %v314_v50 = vmul.f32 0.5, %v313_v7  ;;  %v1980_v7 = vld [vmem:[%s3091_s6 + $0x30] sm:$0xff] }
 0x21e   :  { %v304_v14 = vmul.f32 0.5, %v303_v8  ;;  %2012 = vrsqrt.f32 %v299_v13  ;;  %vm327_vm3 = vweird.f32 %v299_v13 }
 0x21f   :  { %v315_v16 = vsub.f32 1.5, %v314_v50 }
 0x220   :  { %v305_v51 = vsub.f32 1.5, %v304_v14 }
 0x221   :  { %v2011_v15 = vpop.eup %2010  ;;  %v316_v21 = vmul.f32 %v2007_v0, %v315_v16 }
 0x222   :  { %v332_v20 = vmul.f32 %v2011_v15, %v300_v49  ;;  %v306_v9 = vmul.f32 %v2009_v1, %v305_v51  ;;  %vm338_vm14 = vweird.f32 %v2011_v15  ;;  %v1979_v49 = vld [vmem:[%s3091_s6 + $0x28] sm:$0xff]  ;;  %v2423_v5 = vpop.f32.mrf.mxu0  ;;  %v1981_v51 = vld [vmem:[%s3091_s6 + $0x38] sm:$0xff] }
 0x223   :  { %v320_v26 = vsel %vm2347_vm11, %v2007_v0, %v316_v21  ;;  %vm339_vm2 = vmor %vm337_vm15, %vm338_vm14  ;;  %v651_v0 = vsel %vm649_vm6, %v624_v63, 0  ;;  %vm3105_vm11 = vcmask 1043459   ;;  %vm3101_vm14 = vcmask 1046534  }
 0x224   :  { %v2013_v56 = vpop.eup %2012  ;;  %v333_v57 = vmul.f32 %v2011_v15, %v332_v20  ;;  %v310_v24 = vsel %vm309_vm13, %v2009_v1, %v306_v9  ;;  %v342_v11 = vmul.f32 %v320_v26, %v2321_v33  ;;  %v710_v1 = vld [vmem:[%s3093_s8] sm:$0xf]  ;;  %vm3103_vm13 = vcmask 1045509  }
 0x225   :  { %v322_v22 = vmul.f32 %v2013_v56, %v299_v13  ;;  %vm328_vm1 = vweird.f32 %v2013_v56  ;;  %v341_v28 = vmul.f32 %v310_v24, %v2323_v34  ;;  %v736_v2 = vsel %vm649_vm6, %v710_v1, 0 }
 0x226   :  { %v334_v10 = vmul.f32 0.5, %v333_v57  ;;  %vm329_vm4 = vmor %vm327_vm3, %vm328_vm1  ;;  %v347_v37 = vmul.f32 %v345_v29, %v342_v11  ;;  %vm3100_vm15 = vcmask 1047559  }
 0x227   :  { %v323_v3 = vmul.f32 %v2013_v56, %v322_v22  ;;  %v346_v35 = vmul.f32 %v345_v29, %v341_v28 }
 0x228   :  { %v335_v23 = vsub.f32 1.5, %v334_v10  ;;  %v352_v42 = vadd.f32 %v350_v36, %v347_v37 }
 0x229   :  { %v324_v25 = vmul.f32 0.5, %v323_v3  ;;  %v351_v39 = vadd.f32 %v350_v36, %v346_v35 }
 0x22a   :  { %v336_v27 = vmul.f32 %v2011_v15, %v335_v23 }
 0x22b   :  { %v325_v4 = vsub.f32 1.5, %v324_v25 }
 0x22c   :  { %v340_v30 = vsel %vm339_vm2, %v2011_v15, %v336_v27 }
 0x22d   :  { %v326_v12 = vmul.f32 %v2013_v56, %v325_v4  ;;  %v344_v17 = vmul.f32 %v340_v30, %v2332_v41  ;;  %v1966_v41 = vld [vmem:[%s3090_s5] sm:$0xff] }
 0x22f   :  { %v330_v18 = vsel %vm329_vm4, %v2013_v56, %v326_v12  ;;  %v349_v19 = vmul.f32 %v345_v29, %v344_v17 }
 0x230   :  { %v343_v31 = vmul.f32 %v330_v18, %v2337_v45  ;;  %v1970_v45 = vld [vmem:[%s3090_s5 + $0x20] sm:$0xff] }
 0x231   :  { %v354_v34 = vadd.f32 %v350_v36, %v349_v19 }
 0x232   :  { %v348_v38 = vmul.f32 %v345_v29, %v343_v31 }
 0x233   :  { %v502_v33 = vpack.c.bf16 %v354_v34, %v352_v42 }
 0x234   :  { %v353_v40 = vadd.f32 %v350_v36, %v348_v38  ;;  %v1985_v38 = vld [vmem:[%s3094_s9 + $0x18] sm:$0xff] }
 0x236   :  { %v371_v43 = vpack.c.bf16 %v353_v40, %v351_v39 }
 0x238   :  { %444 = vmatpush.bf16.msrb.mxu0 %v371_v43  ;;  %1986 = vmatpush.bf16.msra.mxu1 %v371_v43 }
 0x239   :  { %1987 = vmatpush.bf16.msra.mxu2 %v371_v43  ;;  %1988 = vmatpush.bf16.msra.mxu3 %v371_v43 }
 0x23b   :  { %1874 = vmatmul.msk.bf16.vlgmr.msrb.gmra.mxu0 %vm412_vm5, %v1966_v41  ;;  %1875 = vmatmul.msk.bf16.vlgmr.msra.gmra.mxu1 %vm412_vm5, %v1967_v44  ;;  %v1984_v41 = vld [vmem:[%s3094_s9 + $0x10] sm:$0xff] }
 0x23c   :  { %1878 = vmatmul.msk.bf16.vlgmr.msra.gmra.mxu2 %vm412_vm5, %v1970_v45  ;;  %1880 = vmatmul.msk.bf16.vlgmr.msra.gmra.mxu3 %vm412_vm5, %v1972_v59 }
 0x23d   :  { %574 = vmatpush.bf16.msrb.mxu2 %v502_v33  ;;  %660 = vmatpush.bf16.msrb.mxu3 %v651_v0 }
 0x23e   :  { %745 = vmatpush.bf16.msra.mxu0 %v736_v2  ;;  %873 = vmatpush.bf16.msrb.mxu1 %v1985_v38 }
 0x242   :  { %874 = vmatpush.bf16.msrb.mxu1 %v1984_v41 }
 0x24b   :  { %1876 = vmatmul.msk.bf16.gmra.mxu1 %vm412_vm5, %v1968_v48  ;;  %v1983_v48 = vld [vmem:[%s3094_s9 + $0x8] sm:$0xff] }
 0x24c   :  { %1879 = vmatmul.msk.bf16.gmra.mxu2 %vm412_vm5, %v1971_v52  ;;  %1881 = vmatmul.msk.bf16.gmra.mxu3 %vm412_vm5, %v1973_v46 }
 0x24d   :  { %875 = vmatpush.bf16.msrb.mxu1 %v1983_v48 }
 0x25b   :  { %1877 = vmatmul.msk.bf16.gmra.mxu1 %vm412_vm5, %v1969_v53 }
 0x25c   :  { %1914 = vmatmul.msk.bf16.vlgmr.msrb.gmra.mxu2 %vm412_vm5, %v1974_v54 }
 0x26c   :  { %1915 = vmatmul.msk.bf16.gmra.mxu2 %vm412_vm5, %v1975_v55  ;;  %v1982_v55 = vld [vmem:[%s3094_s9] sm:$0xff] }
 0x26d   :  { %876 = vmatpush.bf16.msrb.mxu1 %v1982_v55 }
 0x27c   :  { %1916 = vmatmul.msk.bf16.gmra.mxu2 %vm412_vm5, %v1976_v58 }
 0x28c   :  { %1917 = vmatmul.msk.bf16.gmra.mxu2 %vm412_vm5, %v1977_v60 }
 0x29c   :  { %1918 = vmatmul.msk.bf16.gmra.mxu2 %vm412_vm5, %v1978_v61 }
 0x2ac   :  { %1919 = vmatmul.msk.bf16.gmra.mxu2 %vm412_vm5, %v1979_v49 }
 0x2b8   :  { %v446_v6 = vpop.f32.mrf.mxu0  ;;  %v451_v8 = vpop.f32.mrf.mxu1 }
 0x2bc   :  { %1920 = vmatmul.msk.bf16.gmra.mxu2 %vm412_vm5, %v1980_v7 }
 0x2bf   :  { %v466_v13 = vpop.f32.mrf.mxu2  ;;  %v476_v17 = vpop.f32.mrf.mxu3 }
 0x2c0   :  { %v448_v50 = vpop.f32.mrf.mxu0  ;;  %v453_v15 = vpop.f32.mrf.mxu1 }
 0x2c1   :  { %v616_v14 = vpack.c.bf16 %v448_v50, %v446_v6  ;;  %v617_v57 = vpack.c.bf16 %v453_v15, %v451_v8 }
 0x2c3   :  { %1922 = vmatmul.msk.bf16.vlgmr.msrb.gmra.mxu3 %vm3102_vm0, %v616_v14 }
 0x2c7   :  { %v468_v16 = vpop.f32.mrf.mxu2  ;;  %v478_v35 = vpop.f32.mrf.mxu3 }
 0x2c8   :  { %v456_v20 = vpop.f32.mrf.mxu1  ;;  %v620_v29 = vpack.c.bf16 %v468_v16, %v466_v13  ;;  %v622_v37 = vpack.c.bf16 %v478_v35, %v476_v17 }
 0x2cc   :  { %1921 = vmatmul.msk.bf16.gmra.mxu2 %vm412_vm5, %v1981_v51 }
 0x2cf   :  { %v471_v56 = vpop.f32.mrf.mxu2  ;;  %v481_v34 = vpop.f32.mrf.mxu3 }
 0x2d0   :  { %v458_v9 = vpop.f32.mrf.mxu1 }
 0x2d1   :  { %v618_v10 = vpack.c.bf16 %v458_v9, %v456_v20 }
 0x2d3   :  { %1923 = vmatmul.msk.bf16.gmra.mxu3 %vm3102_vm0, %v617_v57 }
 0x2d7   :  { %v473_v21 = vpop.f32.mrf.mxu2  ;;  %v483_v42 = vpop.f32.mrf.mxu3 }
 0x2d8   :  { %v461_v62 = vpop.f32.mrf.mxu1  ;;  %v621_v18 = vpack.c.bf16 %v473_v21, %v471_v56  ;;  %v623_v33 = vpack.c.bf16 %v483_v42, %v481_v34 }
 0x2df   :  { %v576_v22 = vpop.f32.mrf.mxu2 }
 0x2e0   :  { %v463_v24 = vpop.f32.mrf.mxu1 }
 0x2e1   :  { %v619_v26 = vpack.c.bf16 %v463_v24, %v461_v62 }
 0x2e3   :  { %1924 = vmatmul.msk.bf16.gmra.mxu3 %vm3102_vm0, %v618_v10 }
 0x2e7   :  { %v578_v3 = vpop.f32.mrf.mxu2 }
 0x2e8   :  { %v702_v23 = vpack.c.bf16 %v578_v3, %v576_v22 }
 0x2ea   :  { %1930 = vmatmul.msk.bf16.vlgmr.msra.gmra.mxu0 %vm3102_vm0, %v702_v23 }
 0x2ef   :  { %v581_v25 = vpop.f32.mrf.mxu2 }
 0x2f3   :  { %1925 = vmatmul.msk.bf16.gmra.mxu3 %vm3102_vm0, %v619_v26 }
 0x2f7   :  { %v583_v27 = vpop.f32.mrf.mxu2 }
 0x2f8   :  { %v703_v4 = vpack.c.bf16 %v583_v27, %v581_v25 }
 0x2fa   :  { %1931 = vmatmul.msk.bf16.gmra.mxu0 %vm3102_vm0, %v703_v4 }
 0x2ff   :  { %v586_v28 = vpop.f32.mrf.mxu2 }
 0x303   :  { %1926 = vmatmul.msk.bf16.gmra.mxu3 %vm3102_vm0, %v620_v29 }
 0x307   :  { %v588_v30 = vpop.f32.mrf.mxu2 }
 0x308   :  { %v704_v11 = vpack.c.bf16 %v588_v30, %v586_v28 }
 0x30a   :  { %1932 = vmatmul.msk.bf16.gmra.mxu0 %vm3102_vm0, %v704_v11 }
 0x30f   :  { %v591_v12 = vpop.f32.mrf.mxu2 }
 0x313   :  { %1927 = vmatmul.msk.bf16.gmra.mxu3 %vm3102_vm0, %v621_v18 }
 0x317   :  { %v593_v19 = vpop.f32.mrf.mxu2 }
 0x318   :  { %v705_v31 = vpack.c.bf16 %v593_v19, %v591_v12 }
 0x31a   :  { %1933 = vmatmul.msk.bf16.gmra.mxu0 %vm3102_vm0, %v705_v31 }
 0x31f   :  { %v596_v36 = vpop.f32.mrf.mxu2 }
 0x323   :  { %1928 = vmatmul.msk.bf16.gmra.mxu3 %vm3102_vm0, %v622_v37 }
 0x327   :  { %v598_v39 = vpop.f32.mrf.mxu2 }
 0x328   :  { %v706_v40 = vpack.c.bf16 %v598_v39, %v596_v36 }
 0x32a   :  { %1934 = vmatmul.msk.bf16.gmra.mxu0 %vm3102_vm0, %v706_v40 }
 0x32f   :  { %v601_v43 = vpop.f32.mrf.mxu2 }
 0x333   :  { %1929 = vmatmul.msk.bf16.gmra.mxu3 %vm3102_vm0, %v623_v33 }
 0x337   :  { %v603_v44 = vpop.f32.mrf.mxu2 }
 0x338   :  { %v707_v45 = vpack.c.bf16 %v603_v44, %v601_v43 }
 0x33a   :  { %1935 = vmatmul.msk.bf16.gmra.mxu0 %vm3102_vm0, %v707_v45 }
 0x33f   :  { %v606_v52 = vpop.f32.mrf.mxu2 }
 0x346   :  { %v662_v58 = vpop.f32.mrf.mxu3 }
 0x347   :  { %v608_v53 = vpop.f32.mrf.mxu2 }
 0x348   :  { %v708_v54 = vpack.c.bf16 %v608_v53, %v606_v52 }
 0x34a   :  { %1936 = vmatmul.msk.bf16.gmra.mxu0 %vm3102_vm0, %v708_v54  ;;  %v2470_v54 = vperm.slane %v2211_v32, 5 }
 0x34e   :  { %v664_v60 = vpop.f32.mrf.mxu3 }
 0x34f   :  { %v611_v59 = vpop.f32.mrf.mxu2 }
 0x356   :  { %v667_v63 = vpop.f32.mrf.mxu3 }
 0x357   :  { %v613_v46 = vpop.f32.mrf.mxu2 }
 0x358   :  { %v709_v61 = vpack.c.bf16 %v613_v46, %v611_v59 }
 0x35a   :  { %1937 = vmatmul.msk.bf16.gmra.mxu0 %vm3102_vm0, %v709_v61 }
 0x35e   :  { %v669_v1 = vpop.f32.mrf.mxu3 }
 0x366   :  { %v672_v8 = vpop.f32.mrf.mxu3 }
 0x367   :  { %v747_v0 = vpop.f32.mrf.mxu0 }
 0x368   :  { %v787_v49 = vmul.f32 %v747_v0, %v662_v58  ;;  %v2473_v58 = vperm.slane %v2211_v32, 6 }
 0x36e   :  { %v674_v50 = vpop.f32.mrf.mxu3 }
 0x36f   :  { %v749_v2 = vpop.f32.mrf.mxu0 }
 0x370   :  { %v788_v6 = vmul.f32 %v749_v2, %v664_v60 }
 0x372   :  { %v803_v7 = vpack.c.bf16 %v788_v6, %v787_v49 }
 0x374   :  { %1954 = vmatmul.msk.bf16.vlgmr.msrb.gmra.mxu1 %vm844_vm7, %v803_v7 }
 0x376   :  { %v677_v20 = vpop.f32.mrf.mxu3 }
 0x377   :  { %v752_v13 = vpop.f32.mrf.mxu0 }
 0x378   :  { %v789_v15 = vmul.f32 %v752_v13, %v667_v63 }
 0x37e   :  { %v679_v22 = vpop.f32.mrf.mxu3 }
 0x37f   :  { %v754_v14 = vpop.f32.mrf.mxu0 }
 0x380   :  { %v790_v16 = vmul.f32 %v754_v14, %v669_v1 }
 0x382   :  { %v804_v51 = vpack.c.bf16 %v790_v16, %v789_v15 }
 0x384   :  { %1955 = vmatmul.msk.bf16.gmra.mxu1 %vm844_vm7, %v804_v51 }
 0x386   :  { %v682_v3 = vpop.f32.mrf.mxu3 }
 0x387   :  { %v757_v56 = vpop.f32.mrf.mxu0 }
 0x388   :  { %v791_v21 = vmul.f32 %v757_v56, %v672_v8 }
 0x38e   :  { %v684_v27 = vpop.f32.mrf.mxu3 }
 0x38f   :  { %v759_v57 = vpop.f32.mrf.mxu0 }
 0x390   :  { %v792_v9 = vmul.f32 %v759_v57, %v674_v50 }
 0x392   :  { %v805_v10 = vpack.c.bf16 %v792_v9, %v791_v21 }
 0x394   :  { %1956 = vmatmul.msk.bf16.gmra.mxu1 %vm844_vm7, %v805_v10  ;;  %v1001_v10 = vrot.slane %v2211_v32, 7 }
 0x396   :  { %v687_v28 = vpop.f32.mrf.mxu3  ;;  %1989 = vpush %v1001_v10  ;;  %v1037_v10 = vlaneseq }
 0x397   :  { %v762_v62 = vpop.f32.mrf.mxu0 }
 0x398   :  { %v793_v24 = vmul.f32 %v762_v62, %v677_v20 }
 0x39e   :  { %v689_v18 = vpop.f32.mrf.mxu3 }
 0x39f   :  { %v764_v23 = vpop.f32.mrf.mxu0 }
 0x3a0   :  { %v794_v25 = vmul.f32 %v764_v23, %v679_v22 }
 0x3a2   :  { %v806_v26 = vpack.c.bf16 %v794_v25, %v793_v24 }
 0x3a4   :  { %1957 = vmatmul.msk.bf16.gmra.mxu1 %vm844_vm7, %v806_v26 }
 0x3a6   :  { %v692_v36 = vpop.f32.mrf.mxu3 }
 0x3a7   :  { %v767_v4 = vpop.f32.mrf.mxu0 }
 0x3a8   :  { %v795_v30 = vmul.f32 %v767_v4, %v682_v3 }
 0x3ae   :  { %v694_v34 = vpop.f32.mrf.mxu3 }
 0x3af   :  { %v769_v29 = vpop.f32.mrf.mxu0 }
 0x3b0   :  { %v796_v11 = vmul.f32 %v769_v29, %v684_v27 }
 0x3b2   :  { %v807_v12 = vpack.c.bf16 %v796_v11, %v795_v30 }
 0x3b4   :  { %1958 = vmatmul.msk.bf16.gmra.mxu1 %vm844_vm7, %v807_v12 }
 0x3b6   :  { %v697_v33 = vpop.f32.mrf.mxu3 }
 0x3b7   :  { %v772_v17 = vpop.f32.mrf.mxu0 }
 0x3b8   :  { %v797_v31 = vmul.f32 %v772_v17, %v687_v28 }
 0x3be   :  { %v699_v44 = vpop.f32.mrf.mxu3 }
 0x3bf   :  { %v774_v19 = vpop.f32.mrf.mxu0 }
 0x3c0   :  { %v798_v35 = vmul.f32 %v774_v19, %v689_v18 }
 0x3c2   :  { %v808_v37 = vpack.c.bf16 %v798_v35, %v797_v31 }
 0x3c4   :  { %1959 = vmatmul.msk.bf16.gmra.mxu1 %vm844_vm7, %v808_v37 }
 0x3c7   :  { %v777_v38 = vpop.f32.mrf.mxu0  ;;  %s1990_s9 = spop %1989 }
 0x3c8   :  { %v799_v40 = vmul.f32 %v777_v38, %v692_v36 }
 0x3cf   :  { %v779_v39 = vpop.f32.mrf.mxu0 }
 0x3d0   :  { %v800_v42 = vmul.f32 %v779_v39, %v694_v34 }
 0x3d2   :  { %v809_v43 = vpack.c.bf16 %v800_v42, %v799_v40 }
 0x3d4   :  { %1960 = vmatmul.msk.bf16.gmra.mxu1 %vm844_vm7, %v809_v43 }
 0x3d7   :  { %v782_v41 = vpop.f32.mrf.mxu0 }
 0x3d8   :  { %v801_v48 = vmul.f32 %v782_v41, %v697_v33 }
 0x3df   :  { %v784_v45 = vpop.f32.mrf.mxu0 }
 0x3e0   :  { %v802_v52 = vmul.f32 %v784_v45, %v699_v44 }
 0x3e2   :  { %v810_v53 = vpack.c.bf16 %v802_v52, %v801_v48 }
 0x3e4   :  { %1961 = vmatmul.msk.bf16.gmra.mxu1 %vm844_vm7, %v810_v53 }
 0x3f1   :  { %v878_v55 = vpop.f32.mrf.mxu1 }
 0x3f2   :  { %v879_v59 = vadd.f32 %v878_v55, %v2470_v54 }
 0x3f4   :  { %v918_v60 = vmax.f32 %v879_v59, 0.0 }
 0x3f6   :  { %v935_v46 = vmul.f32 %v2473_v58, %v918_v60 }
 0x3f8   :  { %v952_v61 = vsel %vm3099_vm8, %v935_v46, 0.0 }
 0x3f9   :  { %v880_v63 = vpop.f32.mrf.mxu1  ;;  %953 = vadd.xlane.f32.xlu0 %v952_v61 }
 0x3fa   :  { %v881_v0 = vadd.f32 %v880_v63, %v2470_v54 }
 0x3fc   :  { %v919_v1 = vmax.f32 %v881_v0, 0.0 }
 0x3fe   :  { %v936_v2 = vmul.f32 %v2473_v58, %v919_v1 }
 0x400   :  { %v955_v49 = vsel %vm3099_vm8, %v936_v2, 0.0 }
 0x401   :  { %956 = vadd.xlane.f32.xlu1 %v955_v49  ;;  %v883_v6 = vpop.f32.mrf.mxu1 }
 0x402   :  { %v884_v7 = vadd.f32 %v883_v6, %v2470_v54 }
 0x404   :  { %v920_v8 = vmax.f32 %v884_v7, 0.0 }
 0x406   :  { %v937_v13 = vmul.f32 %v2473_v58, %v920_v8 }
 0x408   :  { %v958_v50 = vsel %vm3099_vm8, %v937_v13, 0.0 }
 0x409   :  { %v885_v14 = vpop.f32.mrf.mxu1  ;;  %959 = vadd.xlane.f32.xlu2 %v958_v50 }
 0x40a   :  { %v886_v15 = vadd.f32 %v885_v14, %v2470_v54 }
 0x40c   :  { %v921_v16 = vmax.f32 %v886_v15, 0.0 }
 0x40e   :  { %v938_v51 = vmul.f32 %v2473_v58, %v921_v16 }
 0x410   :  { %v961_v20 = vsel %vm3099_vm8, %v938_v51, 0.0 }
 0x411   :  { %962 = vadd.xlane.f32.xlu0 %v961_v20  ;;  %v888_v56 = vpop.f32.mrf.mxu1 }
 0x412   :  { %v889_v57 = vadd.f32 %v888_v56, %v2470_v54 }
 0x414   :  { %v922_v21 = vmax.f32 %v889_v57, 0.0 }
 0x416   :  { %v939_v9 = vmul.f32 %v2473_v58, %v922_v21 }
 0x418   :  { %v964_v22 = vsel %vm3099_vm8, %v939_v9, 0.0 }
 0x419   :  { %v890_v62 = vpop.f32.mrf.mxu1  ;;  %965 = vadd.xlane.f32.xlu1 %v964_v22 }
 0x41a   :  { %v891_v3 = vadd.f32 %v890_v62, %v2470_v54  ;;  %v2524_v62 = vstv %s1990_s9  ;;  %s2118_s9 = smov 8  }
 0x41c   :  { %v923_v23 = vmax.f32 %v891_v3, 0.0 }
 0x41e   :  { %v940_v24 = vmul.f32 %v2473_v58, %v923_v23 }
 0x420   :  { %v967_v25 = vsel %vm3099_vm8, %v940_v24, 0.0 }
 0x421   :  { %968 = vadd.xlane.f32.xlu2 %v967_v25  ;;  %v893_v26 = vpop.f32.mrf.mxu1 }
 0x422   :  { %v894_v27 = vadd.f32 %v893_v26, %v2470_v54 }
 0x424   :  { %v924_v4 = vmax.f32 %v894_v27, 0.0 }
 0x426   :  { %v941_v28 = vmul.f32 %v2473_v58, %v924_v4 }
 0x428   :  { %v970_v29 = vsel %vm3099_vm8, %v941_v28, 0.0 }
 0x429   :  { %v895_v32 = vpop.f32.mrf.mxu1  ;;  %971 = vadd.xlane.f32.xlu0 %v970_v29 }
 0x42a   :  { %v896_v30 = vadd.f32 %v895_v32, %v2470_v54 }
 0x42c   :  { %v925_v11 = vmax.f32 %v896_v30, 0.0 }
 0x42e   :  { %v942_v12 = vmul.f32 %v2473_v58, %v925_v11 }
 0x430   :  { %v973_v17 = vsel %vm3099_vm8, %v942_v12, 0.0 }
 0x431   :  { %974 = vadd.xlane.f32.xlu1 %v973_v17  ;;  %v898_v18 = vpop.f32.mrf.mxu1 }
 0x432   :  { %v899_v19 = vadd.f32 %v898_v18, %v2470_v54 }
 0x434   :  { %v926_v31 = vmax.f32 %v899_v19, 0.0 }
 0x436   :  { %v943_v35 = vmul.f32 %v2473_v58, %v926_v31 }
 0x438   :  { %v976_v36 = vsel %vm3099_vm8, %v943_v35, 0.0 }
 0x439   :  { %v900_v37 = vpop.f32.mrf.mxu1  ;;  %977 = vadd.xlane.f32.xlu2 %v976_v36 }
 0x43a   :  { %v901_v38 = vadd.f32 %v900_v37, %v2470_v54 }
 0x43c   :  { %v927_v34 = vmax.f32 %v901_v38, 0.0 }
 0x43e   :  { %v944_v39 = vmul.f32 %v2473_v58, %v927_v34 }
 0x440   :  { %v979_v40 = vsel %vm3099_vm8, %v944_v39, 0.0 }
 0x441   :  { %980 = vadd.xlane.f32.xlu0 %v979_v40  ;;  %v903_v42 = vpop.f32.mrf.mxu1 }
 0x442   :  { %v904_v43 = vadd.f32 %v903_v42, %v2470_v54 }
 0x444   :  { %v928_v33 = vmax.f32 %v904_v43, 0.0 }
 0x446   :  { %v945_v41 = vmul.f32 %v2473_v58, %v928_v33 }
 0x448   :  { %v982_v44 = vsel %vm3099_vm8, %v945_v41, 0.0 }
 0x449   :  { %v905_v45 = vpop.f32.mrf.mxu1  ;;  %983 = vadd.xlane.f32.xlu1 %v982_v44 }
 0x44a   :  { %v906_v48 = vadd.f32 %v905_v45, %v2470_v54 }
 0x44c   :  { %v929_v52 = vmax.f32 %v906_v48, 0.0 }
 0x44e   :  { %v946_v53 = vmul.f32 %v2473_v58, %v929_v52 }
 0x450   :  { %v985_v55 = vsel %vm3099_vm8, %v946_v53, 0.0 }
 0x451   :  { %986 = vadd.xlane.f32.xlu2 %v985_v55  ;;  %v908_v59 = vpop.f32.mrf.mxu1 }
 0x452   :  { %v909_v60 = vadd.f32 %v908_v59, %v2470_v54 }
 0x454   :  { %v930_v46 = vmax.f32 %v909_v60, 0.0 }
 0x456   :  { %v947_v61 = vmul.f32 %v2473_v58, %v930_v46 }
 0x458   :  { %v988_v63 = vsel %vm3099_vm8, %v947_v61, 0.0 }
 0x459   :  { %v910_v0 = vpop.f32.mrf.mxu1  ;;  %989 = vadd.xlane.f32.xlu0 %v988_v63 }
 0x45a   :  { %v911_v1 = vadd.f32 %v910_v0, %v2470_v54 }
 0x45c   :  { %v931_v2 = vmax.f32 %v911_v1, 0.0 }
 0x45e   :  { %v948_v49 = vmul.f32 %v2473_v58, %v931_v2 }
 0x460   :  { %v991_v6 = vsel %vm3099_vm8, %v948_v49, 0.0 }
 0x461   :  { %992 = vadd.xlane.f32.xlu1 %v991_v6  ;;  %v913_v7 = vpop.f32.mrf.mxu1 }
 0x462   :  { %v914_v8 = vadd.f32 %v913_v7, %v2470_v54 }
 0x464   :  { %v932_v13 = vmax.f32 %v914_v8, 0.0 }
 0x466   :  { %v949_v50 = vmul.f32 %v2473_v58, %v932_v13 }
 0x468   :  { %v994_v14 = vsel %vm3099_vm8, %v949_v50, 0.0 }
 0x469   :  { %v915_v15 = vpop.f32.mrf.mxu1  ;;  %995 = vadd.xlane.f32.xlu2 %v994_v14 }
 0x46a   :  { %v916_v16 = vadd.f32 %v915_v15, %v2470_v54 }
 0x46c   :  { %v933_v51 = vmax.f32 %v916_v16, 0.0  ;;  %v954_v57 = vpop.xlane.xlu0 %953 }
 0x46d   :  { %v2535_v25 = vadd.f32 %v2524_v62, %v954_v57 }
 0x46e   :  { %v950_v20 = vmul.f32 %v2473_v58, %v933_v51  ;;  %v2532_v58 = vand.u32 127, %v1037_v10 }
 0x470   :  { %v997_v56 = vsel %vm3099_vm8, %v950_v20, 0.0  ;;  %v1039_v11 = vperm.slane %v2535_v25, %v2532_v58 }
 0x471   :  { %998 = vadd.xlane.f32.xlu0 %v997_v56 }
 0x474   :  { %v957_v21 = vpop.xlane.xlu1 %956 }
 0x475   :  { %v2527_v3 = vadd.f32 %v2524_v62, %v957_v21 }
 0x477   :  { %v1040_v28 = vperm.slane %v2527_v3, %v2532_v58 }
 0x479   :  { %v1056_v18 = vsel %vm1055_vm9, %v1040_v28, %v1039_v11 }
 0x47c   :  { %v960_v9 = vpop.xlane.xlu2 %959 }
 0x47d   :  { %v2530_v54 = vadd.f32 %v2524_v62, %v960_v9 }
 0x47f   :  { %v1041_v32 = vperm.slane %v2530_v54, %v2532_v58 }
 0x481   :  { %v1058_v31 = vsel %vm3106_vm10, %v1041_v32, %v1056_v18 }
 0x484   :  { %v963_v22 = vpop.xlane.xlu0 %962 }
 0x485   :  { %v2538_v26 = vadd.f32 %v2524_v62, %v963_v22 }
 0x487   :  { %v1042_v12 = vperm.slane %v2538_v26, %v2532_v58 }
 0x489   :  { %v1060_v37 = vsel %vm3105_vm11, %v1042_v12, %v1058_v31 }
 0x48c   :  { %v966_v23 = vpop.xlane.xlu1 %965 }
 0x48d   :  { %v2541_v4 = vadd.f32 %v2524_v62, %v966_v23  ;;  %v2114_v23 = vmov 0  }
 0x48e   :  { %1999 = vset.pattern.permute.xlu2 %v2114_v23  ;;  %1998 = vset.pattern.permute.xlu1 %v2114_v23 }
 0x48f   :  { %v1043_v17 = vperm.slane %v2541_v4, %v2532_v58  ;;  %1997 = vset.pattern.permute.xlu0 %v2114_v23 }
 0x491   :  { %v1062_v34 = vsel %vm3104_vm12, %v1043_v17, %v1060_v37 }
 0x494   :  { %v969_v24 = vpop.xlane.xlu2 %968 }
 0x495   :  { %v2546_v29 = vadd.f32 %v2524_v62, %v969_v24 }
 0x497   :  { %v1044_v19 = vperm.slane %v2546_v29, %v2532_v58 }
 0x499   :  { %v1064_v40 = vsel %vm3103_vm13, %v1044_v19, %v1062_v34 }
 0x49c   :  { %v972_v27 = vpop.xlane.xlu0 %971 }
 0x49d   :  { %v2551_v30 = vadd.f32 %v2524_v62, %v972_v27 }
 0x49f   :  { %v1045_v35 = vperm.slane %v2551_v30, %v2532_v58 }
 0x4a1   :  { %v1066_v42 = vsel %vm3101_vm14, %v1045_v35, %v1064_v40 }
 0x4a4   :  { %v975_v36 = vpop.xlane.xlu1 %974 }
 0x4a5   :  { %v2567_v38 = vadd.f32 %v2524_v62, %v975_v36 }
 0x4a7   :  { %v1046_v39 = vperm.slane %v2567_v38, %v2532_v58 }
 0x4a9   :  { %v1068_v43 = vsel %vm3100_vm15, %v1046_v39, %v1066_v42 }
 0x4aa   :  { %v1078_v33 = vsel %vm3102_vm0, %v1068_v43, -inf }
 0x4ab   :  { %1079 = vmax.xlane.f32.xlu1 %v1078_v33 }
 0x4ac   :  { %v978_v41 = vpop.xlane.xlu2 %977 }
 0x4ad   :  { %v2583_v60 = vadd.f32 %v2524_v62, %v978_v41 }
 0x4af   :  { %v1047_v6 = vperm.slane %v2583_v60, %v2532_v58 }
 0x4b4   :  { %v981_v44 = vpop.xlane.xlu0 %980 }
 0x4b5   :  { %v2577_v52 = vadd.f32 %v2524_v62, %v981_v44 }
 0x4b7   :  { %v1048_v0 = vperm.slane %v2577_v52, %v2532_v58 }
 0x4b9   :  { %v1069_v13 = vsel %vm1055_vm9, %v1048_v0, %v1047_v6 }
 0x4bc   :  { %v984_v45 = vpop.xlane.xlu1 %983 }
 0x4bd   :  { %v2580_v55 = vadd.f32 %v2524_v62, %v984_v45 }
 0x4bf   :  { %v1049_v2 = vperm.slane %v2580_v55, %v2532_v58 }
 0x4c1   :  { %v1070_v14 = vsel %vm3106_vm10, %v1049_v2, %v1069_v13 }
 0x4c4   :  { %v987_v48 = vpop.xlane.xlu2 %986 }
 0x4c5   :  { %v2586_v46 = vadd.f32 %v2524_v62, %v987_v48 }
 0x4c7   :  { %v1050_v7 = vperm.slane %v2586_v46, %v2532_v58 }
 0x4c9   :  { %v1071_v51 = vsel %vm3105_vm11, %v1050_v7, %v1070_v14 }
 0x4cc   :  { %v990_v53 = vpop.xlane.xlu0 %989 }
 0x4cd   :  { %v2589_v63 = vadd.f32 %v2524_v62, %v990_v53 }
 0x4cf   :  { %v1051_v8 = vperm.slane %v2589_v63, %v2532_v58 }
 0x4d1   :  { %v1072_v56 = vsel %vm3104_vm12, %v1051_v8, %v1071_v51 }
 0x4d4   :  { %v993_v59 = vpop.xlane.xlu1 %992 }
 0x4d5   :  { %v2594_v1 = vadd.f32 %v2524_v62, %v993_v59 }
 0x4d7   :  { %v1052_v50 = vperm.slane %v2594_v1, %v2532_v58 }
 0x4d9   :  { %v1073_v21 = vsel %vm3103_vm13, %v1052_v50, %v1072_v56 }
 0x4dc   :  { %v996_v61 = vpop.xlane.xlu2 %995 }
 0x4dd   :  { %v2599_v49 = vadd.f32 %v2524_v62, %v996_v61 }
 0x4df   :  { %v1053_v15 = vperm.slane %v2599_v49, %v2532_v58 }
 0x4e1   :  { %v1074_v9 = vsel %vm3101_vm14, %v1053_v15, %v1073_v21 }
 0x4e4   :  { %v999_v16 = vpop.xlane.xlu0 %998 }
 0x4e5   :  { %v2615_v20 = vadd.f32 %v2524_v62, %v999_v16 }
 0x4e7   :  { %v1054_v57 = vperm.slane %v2615_v20, %v2532_v58 }
 0x4e9   :  { %v1075_v22 = vsel %vm3100_vm15, %v1054_v57, %v1074_v9 }
 0x4ea   :  { %v1081_v10 = vsel %vm3102_vm0, %v1075_v22, -inf }
 0x4eb   :  { %1082 = vmax.xlane.f32.xlu2 %v1081_v10 }
 0x51e   :  { %v1080_v62 = vpop.xlane.xlu1 %1079 }
 0x51f   :  { %v1087_v24 = vperm.slane %v1080_v62, 1  ;;  %v1086_v27 = vperm.slane %v1080_v62, 0  ;;  %v1088_v28 = vperm.slane %v1080_v62, 2  ;;  %v1090_v17 = vperm.slane %v1080_v62, 4 }
 0x520   :  { %v1093_v18 = vperm.slane %v1080_v62, 7  ;;  %v1089_v19 = vperm.slane %v1080_v62, 3  ;;  %v1092_v40 = vperm.slane %v1080_v62, 6  ;;  %v1091_v43 = vperm.slane %v1080_v62, 5 }
 0x521   :  { %v1119_v32 = vsub.f32 %v2527_v3, %v1087_v24  ;;  %v1118_v11 = vsub.f32 %v2535_v25, %v1086_v27  ;;  %v1120_v12 = vsub.f32 %v2530_v54, %v1088_v28  ;;  %v1122_v37 = vsub.f32 %v2541_v4, %v1090_v17 }
 0x522   :  { %v1125_v34 = vsub.f32 %v2567_v38, %v1093_v18  ;;  %v1121_v39 = vsub.f32 %v2538_v26, %v1089_v19  ;;  %v1124_v4 = vsub.f32 %v2551_v30, %v1092_v40  ;;  %v1123_v26 = vsub.f32 %v2546_v29, %v1091_v43 }
 0x523   :  { %v1136_v31 = vmul.f32 1.442695, %v1119_v32  ;;  %v1134_v35 = vmul.f32 1.442695, %v1118_v11  ;;  %v1138_v36 = vmul.f32 1.442695, %v1120_v12 }
 0x524   :  { %v1142_v3 = vmul.f32 1.442695, %v1122_v37  ;;  %v1148_v25 = vmul.f32 1.442695, %v1125_v34  ;;  %v1140_v54 = vmul.f32 1.442695, %v1121_v39 }
 0x525   :  { %2014 = vpow2.f32 %v1136_v31  ;;  %v1146_v38 = vmul.f32 1.442695, %v1124_v4  ;;  %v1144_v45 = vmul.f32 1.442695, %v1123_v26 }
 0x526   :  { %2016 = vpow2.f32 %v1134_v35 }
 0x527   :  { %2018 = vpow2.f32 %v1138_v36 }
 0x528   :  { %2020 = vpow2.f32 %v1142_v3 }
 0x529   :  { %2022 = vpow2.f32 %v1148_v25 }
 0x52a   :  { %2024 = vpow2.f32 %v1140_v54 }
 0x52b   :  { %v2630_v42 = vpop.eup %2014  ;;  %2026 = vpow2.f32 %v1146_v38 }
 0x52c   :  { %v2632_v33 = vpop.eup %2016  ;;  %1186 = vperm.xlu1 %1998, %v2630_v42   ;;  %2028 = vpow2.f32 %v1144_v45 }
 0x52d   :  { %v2635_v41 = vpop.eup %2018  ;;  %1183 = vperm.xlu0 %1997, %v2632_v33  }
 0x52e   :  { %1189 = vperm.xlu2 %1999, %v2635_v41   ;;  %v2641_v44 = vpop.eup %2020 }
 0x52f   :  { %v2643_v48 = vpop.eup %2022 }
 0x530   :  { %v2646_v53 = vpop.eup %2024 }
 0x531   :  { %v2650_v30 = vpop.eup %2026 }
 0x532   :  { %v2653_v29 = vpop.eup %2028 }
 0x534   :  { %1195 = vperm.xlu1 %1998, %v2641_v44  }
 0x535   :  { %1204 = vperm.xlu0 %1997, %v2643_v48  }
 0x536   :  { %1192 = vperm.xlu2 %1999, %v2646_v53  }
 0x53c   :  { %1201 = vperm.xlu1 %1998, %v2650_v30  }
 0x53e   :  { %1198 = vperm.xlu2 %1999, %v2653_v29  }
 0x55e   :  { %v1083_v59 = vpop.xlane.xlu2 %1082 }
 0x55f   :  { %v1096_v61 = vperm.slane %v1083_v59, 2  ;;  %v1095_v0 = vperm.slane %v1083_v59, 1  ;;  %v1094_v2 = vperm.slane %v1083_v59, 0  ;;  %v1099_v13 = vperm.slane %v1083_v59, 5 }
 0x560   :  { %v1098_v50 = vperm.slane %v1083_v59, 4  ;;  %v1097_v14 = vperm.slane %v1083_v59, 3  ;;  %v1100_v10 = vperm.slane %v1083_v59, 6 }
 0x561   :  { %v1128_v6 = vsub.f32 %v2580_v55, %v1096_v61  ;;  %v1127_v7 = vsub.f32 %v2577_v52, %v1095_v0  ;;  %v1126_v8 = vsub.f32 %v2583_v60, %v1094_v2  ;;  %v1131_v56 = vsub.f32 %v2594_v1, %v1099_v13 }
 0x562   :  { %v1130_v57 = vsub.f32 %v2589_v63, %v1098_v50  ;;  %v1129_v21 = vsub.f32 %v2586_v46, %v1097_v14  ;;  %v1101_v52 = vperm.slane %v1083_v59, 7  ;;  %v1132_v63 = vsub.f32 %v2599_v49, %v1100_v10 }
 0x563   :  { %v1154_v15 = vmul.f32 1.442695, %v1128_v6  ;;  %v1152_v16 = vmul.f32 1.442695, %v1127_v7  ;;  %v1150_v51 = vmul.f32 1.442695, %v1126_v8 }
 0x564   :  { %v1160_v55 = vmul.f32 1.442695, %v1131_v56  ;;  %v1158_v9 = vmul.f32 1.442695, %v1130_v57  ;;  %v1156_v60 = vmul.f32 1.442695, %v1129_v21  ;;  %v1133_v46 = vsub.f32 %v2615_v20, %v1101_v52 }
 0x565   :  { %2030 = vpow2.f32 %v1154_v15  ;;  %v1162_v27 = vmul.f32 1.442695, %v1132_v63 }
 0x566   :  { %2032 = vpow2.f32 %v1152_v16  ;;  %v1164_v1 = vmul.f32 1.442695, %v1133_v46 }
 0x567   :  { %2034 = vpow2.f32 %v1150_v51 }
 0x568   :  { %2036 = vpow2.f32 %v1160_v55 }
 0x569   :  { %2038 = vpow2.f32 %v1158_v9 }
 0x56a   :  { %2040 = vpow2.f32 %v1156_v60 }
 0x56b   :  { %v2662_v22 = vpop.eup %2030  ;;  %2042 = vpow2.f32 %v1164_v1 }
 0x56c   :  { %v2664_v23 = vpop.eup %2032  ;;  %1213 = vperm.xlu0 %1997, %v2662_v22   ;;  %2044 = vpow2.f32 %v1162_v27 }
 0x56d   :  { %v2667_v62 = vpop.eup %2034  ;;  %1210 = vperm.xlu1 %1998, %v2664_v23  }
 0x56e   :  { %1207 = vperm.xlu2 %1999, %v2667_v62   ;;  %v2673_v24 = vpop.eup %2036 }
 0x56f   :  { %v2675_v28 = vpop.eup %2038 }
 0x570   :  { %v2678_v32 = vpop.eup %2040 }
 0x571   :  { %v2682_v20 = vpop.eup %2042 }
 0x572   :  { %v2684_v11 = vpop.eup %2044 }
 0x574   :  { %1222 = vperm.xlu0 %1997, %v2673_v24  }
 0x575   :  { %1219 = vperm.xlu1 %1998, %v2675_v28  }
 0x576   :  { %1216 = vperm.xlu2 %1999, %v2678_v32  }
 0x57d   :  { %1228 = vperm.xlu1 %1998, %v2682_v20  }
 0x57e   :  { %1225 = vperm.xlu2 %1999, %v2684_v11  }
 0x588   :  { %v1190_v49 = vpop.permute.xlu2 %1189 }
 0x589   :  { %v1232_v37 = vperm.slane %v1190_v49, %v2532_v58 }
 0x590   :  { %v1193_v18 = vpop.permute.xlu2 %1192 }
 0x591   :  { %v1233_v3 = vperm.slane %v1193_v18, %v2532_v58 }
 0x598   :  { %v1199_v40 = vpop.permute.xlu2 %1198 }
 0x599   :  { %v1235_v4 = vperm.slane %v1199_v40, %v2532_v58 }
 0x59e   :  { %v1187_v12 = vpop.permute.xlu1 %1186 }
 0x59f   :  { %v1184_v17 = vpop.permute.xlu0 %1183  ;;  %v1231_v19 = vperm.slane %v1187_v12, %v2532_v58 }
 0x5a0   :  { %v1230_v31 = vperm.slane %v1184_v17, %v2532_v58 }
 0x5a2   :  { %v1246_v35 = vsel %vm1055_vm9, %v1231_v19, %v1230_v31 }
 0x5a3   :  { %v1247_v34 = vsel %vm3106_vm10, %v1232_v37, %v1246_v35 }
 0x5a4   :  { %v1248_v25 = vsel %vm3105_vm11, %v1233_v3, %v1247_v34 }
 0x5a6   :  { %v1196_v36 = vpop.permute.xlu1 %1195 }
 0x5a7   :  { %v1234_v39 = vperm.slane %v1196_v36, %v2532_v58  ;;  %v1205_v43 = vpop.permute.xlu0 %1204 }
 0x5a8   :  { %v1237_v45 = vperm.slane %v1205_v43, %v2532_v58 }
 0x5a9   :  { %v1249_v54 = vsel %vm3104_vm12, %v1234_v39, %v1248_v25 }
 0x5aa   :  { %v1250_v59 = vsel %vm3103_vm13, %v1235_v4, %v1249_v54 }
 0x5ae   :  { %v1202_v26 = vpop.permute.xlu1 %1201 }
 0x5af   :  { %v1236_v38 = vperm.slane %v1202_v26, %v2532_v58 }
 0x5b1   :  { %v1251_v61 = vsel %vm3101_vm14, %v1236_v38, %v1250_v59 }
 0x5b2   :  { %v1252_v0 = vsel %vm3100_vm15, %v1237_v45, %v1251_v61 }
 0x5b3   :  { %v1262_v2 = vsel %vm3102_vm0, %v1252_v0, 0.0 }
 0x5b4   :  { %1263 = vadd.xlane.f32.xlu0 %v1262_v2 }
 0x5c8   :  { %v1208_v6 = vpop.permute.xlu2 %1207 }
 0x5c9   :  { %v1238_v50 = vperm.slane %v1208_v6, %v2532_v58 }
 0x5d0   :  { %v1217_v14 = vpop.permute.xlu2 %1216 }
 0x5d1   :  { %v1241_v21 = vperm.slane %v1217_v14, %v2532_v58 }
 0x5d8   :  { %v1226_v10 = vpop.permute.xlu2 %1225 }
 0x5d9   :  { %v1244_v63 = vperm.slane %v1226_v10, %v2532_v58 }
 0x5de   :  { %v1214_v7 = vpop.permute.xlu0 %1213 }
 0x5df   :  { %v1211_v8 = vpop.permute.xlu1 %1210  ;;  %v1240_v15 = vperm.slane %v1214_v7, %v2532_v58 }
 0x5e0   :  { %v1239_v13 = vperm.slane %v1211_v8, %v2532_v58 }
 0x5e2   :  { %v1253_v16 = vsel %vm1055_vm9, %v1239_v13, %v1238_v50 }
 0x5e3   :  { %v1254_v51 = vsel %vm3106_vm10, %v1240_v15, %v1253_v16 }
 0x5e4   :  { %v1255_v52 = vsel %vm3105_vm11, %v1241_v21, %v1254_v51 }
 0x5e6   :  { %v1223_v56 = vpop.permute.xlu0 %1222 }
 0x5e7   :  { %v1220_v57 = vpop.permute.xlu1 %1219  ;;  %v1243_v9 = vperm.slane %v1223_v56, %v2532_v58 }
 0x5e8   :  { %v1242_v55 = vperm.slane %v1220_v57, %v2532_v58 }
 0x5ea   :  { %v1256_v60 = vsel %vm3104_vm12, %v1242_v55, %v1255_v52 }
 0x5eb   :  { %v1257_v46 = vsel %vm3103_vm13, %v1243_v9, %v1256_v60 }
 0x5ec   :  { %v1258_v49 = vsel %vm3101_vm14, %v1244_v63, %v1257_v46 }
 0x5ef   :  { %v1229_v1 = vpop.permute.xlu1 %1228 }
 0x5f0   :  { %v1245_v27 = vperm.slane %v1229_v1, %v2532_v58 }
 0x5f2   :  { %v1259_v12 = vsel %vm3100_vm15, %v1245_v27, %v1258_v49 }
 0x5f3   :  { %v1265_v17 = vsel %vm3102_vm0, %v1259_v12, 0.0 }
 0x5f4   :  { %1266 = vadd.xlane.f32.xlu2 %v1265_v17 }
 0x627   :  { %v1264_v18 = vpop.xlane.xlu0 %1263 }
 0x628   :  { %v1270_v19 = vperm.slane %v1264_v18, 0  ;;  %v2720_v31 = vperm.slane %v1264_v18, 1  ;;  %v2722_v35 = vperm.slane %v1264_v18, 2  ;;  %v2725_v36 = vperm.slane %v1264_v18, 6 }
 0x629   :  { %v2728_v37 = vperm.slane %v1264_v18, 7  ;;  %v2730_v39 = vperm.slane %v1264_v18, 3  ;;  %v2740_v38 = vperm.slane %v1264_v18, 4  ;;  %v2742_v45 = vperm.slane %v1264_v18, 5 }
 0x62a   :  { %2046 = vrcp.f32 %v1270_v19  ;;  %v1311_v4 = vand.u32 2147483647, %v1270_v19  ;;  %v1313_v26 = vand.u32 2147483648, %v1270_v19  ;;  %vm1307_vm1 = vweird.f32 %v1270_v19 }
 0x62b   :  { %2048 = vrcp.f32 %v2720_v31  ;;  %vm1412_vm3 = vweird.f32 %v2728_v37  ;;  %v1416_v6 = vand.u32 2147483647, %v2728_v37  ;;  %v1418_v7 = vand.u32 2147483648, %v2728_v37 }
 0x62c   :  { %2050 = vrcp.f32 %v2722_v35  ;;  %vm1312_vm4 = vcmp.eq.f32.partialorder %v1311_v4, 8.507059e+37  ;;  %v1314_v14 = vor.u32 1.1754944e-38, %v1313_v26  ;;  %v1401_v51 = vand.u32 2147483647, %v2725_v36 }
 0x62d   :  { %2052 = vrcp.f32 %v2725_v36  ;;  %v1403_v56 = vand.u32 2147483648, %v2725_v36  ;;  %vm1322_vm7 = vweird.f32 %v2720_v31  ;;  %v1328_v46 = vand.u32 2147483648, %v2720_v31 }
 0x62e   :  { %2054 = vrcp.f32 %v2728_v37  ;;  %v1326_v27 = vand.u32 2147483647, %v2720_v31 }
 0x62f   :  { %2056 = vrcp.f32 %v2730_v39 }
 0x630   :  { %v2047_v34 = vpop.eup %2046  ;;  %2058 = vrcp.f32 %v2740_v38  ;;  %vm1327_vm14 = vcmp.eq.f32.partialorder %v1326_v27, 8.507059e+37 }
 0x631   :  { %v2733_v3 = vpop.eup %2048  ;;  %v1303_v40 = vmul.f32 %v2047_v34, %v1270_v19  ;;  %vm1308_vm2 = vweird.f32 %v2047_v34  ;;  %2060 = vrcp.f32 %v2742_v45 }
 0x632   :  { %v2736_v25 = vpop.eup %2050  ;;  %v1318_v54 = vmul.f32 %v2733_v3, %v2720_v31  ;;  %vm1309_vm5 = vmor %vm1307_vm1, %vm1308_vm2  ;;  %vm1323_vm6 = vweird.f32 %v2733_v3 }
 0x633   :  { %v1304_v43 = vsub.f32 1.0, %v1303_v40  ;;  %v1333_v0 = vmul.f32 %v2736_v25, %v2722_v35  ;;  %v2053_v2 = vpop.eup %2052  ;;  %vm2767_vm8 = vmor %vm1322_vm7, %vm1323_vm6  ;;  %v1419_v40 = vor.u32 1.1754944e-38, %v1418_v7  ;;  %vm1402_vm7 = vcmp.eq.f32.partialorder %v1401_v51, 8.507059e+37 }
 0x634   :  { %v1319_v59 = vsub.f32 1.0, %v1318_v54  ;;  %v2055_v13 = vpop.eup %2054  ;;  %v1393_v15 = vmul.f32 %v2053_v2, %v2725_v36  ;;  %vm1398_vm1 = vweird.f32 %v2053_v2  ;;  %v1341_v7 = vand.u32 2147483647, %v2722_v35 }
 0x635   :  { %v1305_v61 = vmul.f32 %v2047_v34, %v1304_v43  ;;  %v1408_v16 = vmul.f32 %v2055_v13, %v2728_v37  ;;  %v1334_v9 = vsub.f32 1.0, %v1333_v0  ;;  %v2757_v52 = vpop.eup %2056  ;;  %vm1413_vm2 = vweird.f32 %v2055_v13 }
 0x636   :  { %v1320_v8 = vmul.f32 %v2733_v3, %v1319_v59  ;;  %v1394_v21 = vsub.f32 1.0, %v1393_v15  ;;  %v1348_v19 = vmul.f32 %v2757_v52, %v2730_v39  ;;  %vm1414_vm6 = vmor %vm1412_vm3, %vm1413_vm2  ;;  %v1343_v37 = vand.u32 2147483648, %v2722_v35 }
 0x637   :  { %v1306_v50 = vadd.f32 %v2047_v34, %v1305_v61  ;;  %v1409_v60 = vsub.f32 1.0, %v1408_v16  ;;  %v1335_v18 = vmul.f32 %v2736_v25, %v1334_v9  ;;  %vm1342_vm3 = vcmp.eq.f32.partialorder %v1341_v7, 8.507059e+37 }
 0x638   :  { %v1321_v55 = vadd.f32 %v2733_v3, %v1320_v8  ;;  %v1395_v1 = vmul.f32 %v2053_v2, %v1394_v21  ;;  %v1349_v0 = vsub.f32 1.0, %v1348_v19  ;;  %v1358_v16 = vand.u32 2147483648, %v2730_v39 }
 0x639   :  { %v1310_v57 = vsel %vm1309_vm5, %v2047_v34, %v1306_v50  ;;  %v1410_v49 = vmul.f32 %v2055_v13, %v1409_v60  ;;  %vm1397_vm5 = vweird.f32 %v2725_v36  ;;  %v1404_v36 = vor.u32 1.1754944e-38, %v1403_v56 }
 0x63a   :  { %v1315_v10 = vsel %vm1312_vm4, %v1314_v14, %v1310_v57  ;;  %v1396_v17 = vadd.f32 %v2053_v2, %v1395_v1  ;;  %vm1417_vm4 = vcmp.eq.f32.partialorder %v1416_v6, 8.507059e+37  ;;  %vm1399_vm15 = vmor %vm1397_vm5, %vm1398_vm1  ;;  %v1329_v34 = vor.u32 1.1754944e-38, %v1328_v46  ;;  %v2059_v6 = vpop.eup %2058 }
 0x63b   :  { %v1316_v63 = vmul.f32 %v2632_v33, %v1315_v10  ;;  %v1325_v33 = vsel %vm2767_vm8, %v2733_v3, %v1321_v55  ;;  %v1411_v31 = vadd.f32 %v2055_v13, %v1410_v49  ;;  %vm1338_vm8 = vweird.f32 %v2736_v25 }
 0x63c   :  { %v1400_v54 = vsel %vm1399_vm15, %v2053_v2, %v1396_v17  ;;  %v1330_v3 = vsel %vm1327_vm14, %v1329_v34, %v1325_v33  ;;  %v1336_v61 = vadd.f32 %v2736_v25, %v1335_v18  ;;  %vm1337_vm15 = vweird.f32 %v2722_v35  ;;  %v2061_v35 = vpop.eup %2060  ;;  %v2085_v18 = vld [vmem:[%s3085_s0 + $0x8] sm:$0xff] }
 0x63d   :  { %1559 = vperm.xlu1 %1998, %v1316_v63   ;;  %v1415_v43 = vsel %vm1414_vm6, %v2055_v13, %v1411_v31  ;;  %v1405_v4 = vsel %vm1402_vm7, %v1404_v36, %v1400_v54  ;;  %v1331_v2 = vmul.f32 %v2630_v42, %v1330_v3  ;;  %vm1339_vm14 = vmor %vm1337_vm15, %vm1338_vm8  ;;  %v1350_v13 = vmul.f32 %v2757_v52, %v1349_v0  ;;  %v2084_v63 = vld [vmem:[%s3085_s0] sm:$0xff] }
 0x63e   :  { %v1420_v26 = vsel %vm1417_vm4, %v1419_v40, %v1415_v43  ;;  %v1406_v59 = vmul.f32 %v2650_v30, %v1405_v4  ;;  %v1340_v30 = vsel %vm1339_vm14, %v2736_v25, %v1336_v61  ;;  %v1344_v50 = vor.u32 1.1754944e-38, %v1343_v37 }
 0x63f   :  { %v1421_v8 = vmul.f32 %v2643_v48, %v1420_v26  ;;  %v1363_v48 = vmul.f32 %v2059_v6, %v2740_v38  ;;  %v1351_v42 = vadd.f32 %v2757_v52, %v1350_v13  ;;  %vm1353_vm1 = vweird.f32 %v2757_v52 }
 0x640   :  { %1577 = vperm.xlu2 %1999, %v1406_v59   ;;  %v1345_v14 = vsel %vm1342_vm3, %v1344_v50, %v1340_v30  ;;  %vm1352_vm2 = vweird.f32 %v2730_v39  ;;  %v1356_v25 = vand.u32 2147483647, %v2730_v39  ;;  %v1378_v21 = vmul.f32 %v2061_v35, %v2742_v45 }
 0x641   :  { %1580 = vperm.xlu0 %1997, %v1421_v8   ;;  %v1364_v15 = vsub.f32 1.0, %v1363_v48  ;;  %v1346_v51 = vmul.f32 %v2635_v41, %v1345_v14  ;;  %vm1354_vm5 = vmor %vm1352_vm2, %vm1353_vm1  ;;  %v1359_v55 = vor.u32 1.1754944e-38, %v1358_v16  ;;  %vm1368_vm6 = vweird.f32 %v2059_v6  ;;  %v50_v41 = vld [vmem:[%s3095_s10] sm:$0xff] }
 0x642   :  { %v1355_v56 = vsel %vm1354_vm5, %v2757_v52, %v1351_v42  ;;  %vm1357_vm4 = vcmp.eq.f32.partialorder %v1356_v25, 8.507059e+37  ;;  %v1379_v10 = vsub.f32 1.0, %v1378_v21  ;;  %v1373_v46 = vand.u32 2147483648, %v2740_v38  ;;  %1667 = vmatpush.msra.mxu2 %v50_v41 }
 0x643   :  { %v1365_v57 = vmul.f32 %v2059_v6, %v1364_v15  ;;  %v1360_v9 = vsel %vm1357_vm4, %v1359_v55, %v1355_v56  ;;  %vm1367_vm7 = vweird.f32 %v2740_v38  ;;  %v1371_v52 = vand.u32 2147483647, %v2740_v38  ;;  %1962 = vmatmul.msk.f32.vlgmr.msra.gmra.mxu2 %vm3102_vm0, %v2084_v63 }
 0x644   :  { %v1361_v39 = vmul.f32 %v2646_v53, %v1360_v9  ;;  %vm1369_vm8 = vmor %vm1367_vm7, %vm1368_vm6  ;;  %v1380_v27 = vmul.f32 %v2061_v35, %v1379_v10  ;;  %v1374_v49 = vor.u32 1.1754944e-38, %v1373_v46  ;;  %vm1383_vm14 = vweird.f32 %v2061_v35 }
 0x645   :  { %1562 = vperm.xlu1 %1998, %v1331_v2   ;;  %v1366_v60 = vadd.f32 %v2059_v6, %v1365_v57  ;;  %vm1372_vm15 = vcmp.eq.f32.partialorder %v1371_v52, 8.507059e+37  ;;  %v1388_v53 = vand.u32 2147483648, %v2742_v45  ;;  %vm1382_vm3 = vweird.f32 %v2742_v45 }
 0x646   :  { %v1381_v17 = vadd.f32 %v2061_v35, %v1380_v27  ;;  %v1386_v38 = vand.u32 2147483647, %v2742_v45  ;;  %vm1384_vm1 = vmor %vm1382_vm3, %vm1383_vm14 }
 0x647   :  { %v1370_v1 = vsel %vm1369_vm8, %v2059_v6, %v1366_v60  ;;  %v1389_v31 = vor.u32 1.1754944e-38, %v1388_v53 }
 0x648   :  { %v1375_v12 = vsel %vm1372_vm15, %v1374_v49, %v1370_v1  ;;  %v1385_v19 = vsel %vm1384_vm1, %v2061_v35, %v1381_v17  ;;  %vm1387_vm2 = vcmp.eq.f32.partialorder %v1386_v38, 8.507059e+37 }
 0x649   :  { %v1376_v33 = vmul.f32 %v2641_v44, %v1375_v12  ;;  %v1390_v36 = vsel %vm1387_vm2, %v1389_v31, %v1385_v19 }
 0x64a   :  { %v1391_v34 = vmul.f32 %v2653_v29, %v1390_v36 }
 0x64b   :  { %1963 = vmatmul.msk.f32.gmra.mxu2 %vm3102_vm0, %v2085_v18 }
 0x64d   :  { %1565 = vperm.xlu1 %1998, %v1346_v51  }
 0x655   :  { %1568 = vperm.xlu1 %1998, %v1361_v39  }
 0x65d   :  { %1571 = vperm.xlu1 %1998, %v1376_v33  }
 0x665   :  { %1574 = vperm.xlu1 %1998, %v1391_v34  }
 0x667   :  { %v1267_v44 = vpop.xlane.xlu2 %1266 }
 0x668   :  { %v1278_v40 = vperm.slane %v1267_v44, 0  ;;  %v2819_v54 = vperm.slane %v1267_v44, 1  ;;  %v2821_v45 = vperm.slane %v1267_v44, 2  ;;  %v2823_v43 = vperm.slane %v1267_v44, 4 }
 0x669   :  { %v2825_v4 = vperm.slane %v1267_v44, 5  ;;  %v2828_v3 = vperm.slane %v1267_v44, 3  ;;  %v2831_v26 = vperm.slane %v1267_v44, 7  ;;  %v2836_v0 = vperm.slane %v1267_v44, 6 }
 0x66a   :  { %2062 = vrcp.f32 %v1278_v40  ;;  %v1463_v29 = vand.u32 2147483648, %v2821_v45  ;;  %v1493_v59 = vand.u32 2147483648, %v2823_v43  ;;  %v1431_v61 = vand.u32 2147483647, %v1278_v40 }
 0x66b   :  { %2064 = vrcp.f32 %v2819_v54  ;;  %v1461_v6 = vand.u32 2147483647, %v2821_v45  ;;  %v1433_v8 = vand.u32 2147483648, %v1278_v40  ;;  %v1491_v2 = vand.u32 2147483647, %v2823_v43 }
 0x66c   :  { %2066 = vrcp.f32 %v2821_v45  ;;  %vm1457_vm5 = vweird.f32 %v2821_v45  ;;  %v1464_v30 = vor.u32 1.1754944e-38, %v1463_v29  ;;  %vm1427_vm4 = vweird.f32 %v1278_v40 }
 0x66d   :  { %2068 = vrcp.f32 %v2823_v43  ;;  %v2846_v50 = vor.u32 1.1754944e-38, %v1493_v59  ;;  %vm2848_vm6 = vcmp.eq.f32.partialorder %v1431_v61, 8.507059e+37  ;;  %v1536_v42 = vand.u32 2147483647, %v2831_v26 }
 0x66e   :  { %2070 = vrcp.f32 %v2825_v4  ;;  %vm1487_vm7 = vweird.f32 %v2823_v43  ;;  %vm2858_vm8 = vcmp.eq.f32.partialorder %v1461_v6, 8.507059e+37  ;;  %v1434_v25 = vor.u32 1.1754944e-38, %v1433_v8 }
 0x66f   :  { %2072 = vrcp.f32 %v2828_v3  ;;  %v1506_v57 = vand.u32 2147483647, %v2825_v4  ;;  %v1508_v21 = vand.u32 2147483648, %v2825_v4  ;;  %vm2867_vm14 = vcmp.eq.f32.partialorder %v1491_v2, 8.507059e+37 }
 0x670   :  { %v2063_v37 = vpop.eup %2062  ;;  %2074 = vrcp.f32 %v2831_v26  ;;  %vm1502_vm3 = vweird.f32 %v2825_v4  ;;  %vm1442_vm1 = vweird.f32 %v2819_v54  ;;  %vm1532_vm13 = vweird.f32 %v2831_v26 }
 0x671   :  { %v2842_v7 = vpop.eup %2064  ;;  %v1423_v13 = vmul.f32 %v2063_v37, %v1278_v40  ;;  %2076 = vrcp.f32 %v2836_v0  ;;  %vm1428_vm15 = vweird.f32 %v2063_v37  ;;  %v1446_v17 = vand.u32 2147483647, %v2819_v54 }
 0x672   :  { %v2067_v48 = vpop.eup %2066  ;;  %v1438_v15 = vmul.f32 %v2842_v7, %v2819_v54  ;;  %vm1443_vm0 = vweird.f32 %v2842_v7  ;;  %vm1429_vm11 = vmor %vm1427_vm4, %vm1428_vm15  ;;  %v1448_v59 = vand.u32 2147483648, %v2819_v54  ;;  %vm1472_vm15 = vweird.f32 %v2828_v3 }
 0x673   :  { %v1453_v35 = vmul.f32 %v2067_v48, %v2821_v45  ;;  %v1424_v51 = vsub.f32 1.0, %v1423_v13  ;;  %v2069_v56 = vpop.eup %2068  ;;  %vm1458_vm2 = vweird.f32 %v2067_v48  ;;  %vm2905_vm4 = vmor %vm1442_vm1, %vm1443_vm0 }
 0x674   :  { %v1439_v55 = vsub.f32 1.0, %v1438_v15  ;;  %v2864_v9 = vpop.eup %2070  ;;  %v1483_v60 = vmul.f32 %v2069_v56, %v2823_v43  ;;  %vm1488_vm12 = vweird.f32 %v2069_v56  ;;  %vm1459_vm10 = vmor %vm1457_vm5, %vm1458_vm2  ;;  %v1538_v15 = vand.u32 2147483648, %v2831_v26 }
 0x675   :  { %v1454_v41 = vsub.f32 1.0, %v1453_v35  ;;  %v1425_v46 = vmul.f32 %v2063_v37, %v1424_v51  ;;  %v2873_v39 = vpop.eup %2072  ;;  %v1498_v52 = vmul.f32 %v2864_v9, %v2825_v4  ;;  %vm1489_vm5 = vmor %vm1487_vm7, %vm1488_vm12  ;;  %v1449_v35 = vor.u32 1.1754944e-38, %v1448_v59 }
 0x676   :  { %v1440_v63 = vmul.f32 %v2842_v7, %v1439_v55  ;;  %v2879_v1 = vpop.eup %2074  ;;  %v1484_v27 = vsub.f32 1.0, %v1483_v60  ;;  %v1468_v34 = vmul.f32 %v2873_v39, %v2828_v3  ;;  %vm1447_vm12 = vcmp.eq.f32.partialorder %v1446_v17, 8.507059e+37 }
 0x677   :  { %v1455_v49 = vmul.f32 %v2067_v48, %v1454_v41  ;;  %v1426_v12 = vadd.f32 %v2063_v37, %v1425_v46  ;;  %v1528_v53 = vmul.f32 %v2879_v1, %v2831_v26  ;;  %v1499_v33 = vsub.f32 1.0, %v1498_v52  ;;  %v2888_v18 = vpop.eup %2076 }
 0x678   :  { %v1441_v38 = vadd.f32 %v2842_v7, %v1440_v63  ;;  %v1485_v19 = vmul.f32 %v2069_v56, %v1484_v27  ;;  %v1469_v14 = vsub.f32 1.0, %v1468_v34  ;;  %vm1507_vm7 = vcmp.eq.f32.partialorder %v1506_v57, 8.507059e+37 }
 0x679   :  { %v1456_v31 = vadd.f32 %v2067_v48, %v1455_v49  ;;  %v1430_v36 = vsel %vm1429_vm11, %v2063_v37, %v1426_v12  ;;  %v1529_v40 = vsub.f32 1.0, %v1528_v53  ;;  %v1500_v29 = vmul.f32 %v2864_v9, %v1499_v33 }
 0x67a   :  { %v1435_v44 = vsel %vm2848_vm6, %v1434_v25, %v1430_v36  ;;  %v1486_v61 = vadd.f32 %v2069_v56, %v1485_v19  ;;  %vm1503_vm11 = vweird.f32 %v2864_v9  ;;  %v1470_v16 = vmul.f32 %v2873_v39, %v1469_v14  ;;  %v1689_v14 = vld [vmem:[%s3096_s11 + $0x70] sm:$0xff] }
 0x67b   :  { %v1460_v6 = vsel %vm1459_vm10, %v2067_v48, %v1456_v31  ;;  %v1436_v8 = vmul.f32 %v2667_v62, %v1435_v44  ;;  %v1530_v2 = vmul.f32 %v2879_v1, %v1529_v40  ;;  %vm1533_vm10 = vweird.f32 %v2879_v1  ;;  %vm2930_vm0 = vmor %vm1502_vm3, %vm1503_vm11 }
 0x67c   :  { %v1465_v37 = vsel %vm2858_vm8, %v1464_v30, %v1460_v6  ;;  %v1501_v62 = vadd.f32 %v2864_v9, %v1500_v29  ;;  %v1490_v13 = vsel %vm1489_vm5, %v2069_v56, %v1486_v61  ;;  %v1445_v48 = vsel %vm2905_vm4, %v2842_v7, %v1441_v38  ;;  %vm2943_vm6 = vmor %vm1532_vm13, %vm1533_vm10 }
 0x67d   :  { %v1466_v54 = vmul.f32 %v2662_v22, %v1465_v37  ;;  %1583 = vperm.xlu1 %1998, %v1436_v8   ;;  %v1495_v43 = vsel %vm2867_vm14, %v2846_v50, %v1490_v13  ;;  %v1531_v30 = vadd.f32 %v2879_v1, %v1530_v2  ;;  %v1509_v25 = vor.u32 1.1754944e-38, %v1508_v21 }
 0x67e   :  { %v1496_v7 = vmul.f32 %v2675_v28, %v1495_v43  ;;  %v1505_v50 = vsel %vm2930_vm0, %v2864_v9, %v1501_v62  ;;  %v1450_v56 = vsel %vm1447_vm12, %v1449_v35, %v1445_v48  ;;  %v1513_v28 = vmul.f32 %v2888_v18, %v2836_v0  ;;  %v1690_v62 = vld [vmem:[%s3096_s11 + $0x78] sm:$0xff]  ;;  %v1688_v43 = vld [vmem:[%s3096_s11 + $0x68] sm:$0xff]  ;;  %v1685_v35 = vld [vmem:[%s3096_s11 + $0x50] sm:$0xff] }
 0x67f   :  { %1589 = vperm.xlu0 %1997, %v1466_v54   ;;  %v1535_v55 = vsel %vm2943_vm6, %v2879_v1, %v1531_v30  ;;  %v1471_v9 = vadd.f32 %v2873_v39, %v1470_v16  ;;  %vm1473_vm13 = vweird.f32 %v2873_v39  ;;  %v1539_v60 = vor.u32 1.1754944e-38, %v1538_v15  ;;  %1692 = vmatpush.msra.mxu3 %v1690_v62  ;;  %v1687_v30 = vld [vmem:[%s3096_s11 + $0x60] sm:$0xff]  ;;  %v1686_v15 = vld [vmem:[%s3096_s11 + $0x58] sm:$0xff] }
 0x680   :  { %1595 = vperm.xlu2 %1999, %v1496_v7   ;;  %v1510_v10 = vsel %vm1507_vm7, %v1509_v25, %v1505_v50  ;;  %v1478_v21 = vand.u32 2147483648, %v2828_v3  ;;  %v1514_v41 = vsub.f32 1.0, %v1513_v28  ;;  %vm1537_vm8 = vcmp.eq.f32.partialorder %v1536_v42, 8.507059e+37  ;;  %vm1474_vm14 = vmor %vm1472_vm15, %vm1473_vm13  ;;  %v1684_v7 = vld [vmem:[%s3096_s11 + $0x48] sm:$0xff]  ;;  %v1683_v50 = vld [vmem:[%s3096_s11 + $0x40] sm:$0xff] }
 0x681   :  { %v1451_v46 = vmul.f32 %v2664_v23, %v1450_v56  ;;  %v1476_v52 = vand.u32 2147483647, %v2828_v3  ;;  %v1540_v4 = vsel %vm1537_vm8, %v1539_v60, %v1535_v55  ;;  %v1511_v57 = vmul.f32 %v2673_v24, %v1510_v10  ;;  %1693 = vmatpush.msra.mxu3 %v1689_v14  ;;  %v1682_v16 = vld [vmem:[%s3096_s11 + $0x38] sm:$0xff]  ;;  %v1681_v25 = vld [vmem:[%s3096_s11 + $0x30] sm:$0xff]  ;;  %v1680_v56 = vld [vmem:[%s3096_s11 + $0x28] sm:$0xff] }
 0x682   :  { %v1475_v63 = vsel %vm1474_vm14, %v2873_v39, %v1471_v9  ;;  %v1515_v1 = vmul.f32 %v2888_v18, %v1514_v41  ;;  %v1479_v27 = vor.u32 1.1754944e-38, %v1478_v21  ;;  %v1541_v49 = vmul.f32 %v2682_v20, %v1540_v4  ;;  %v1679_v9 = vld [vmem:[%s3096_s11 + $0x20] sm:$0xff]  ;;  %v1678_v21 = vld [vmem:[%s3096_s11 + $0x18] sm:$0xff] }
 0x683   :  { %vm1477_vm3 = vcmp.eq.f32.partialorder %v1476_v52, 8.507059e+37  ;;  %vm1518_vm1 = vweird.f32 %v2888_v18  ;;  %v1523_v3 = vand.u32 2147483648, %v2836_v0  ;;  %vm1517_vm2 = vweird.f32 %v2836_v0  ;;  %1694 = vmatpush.msra.mxu3 %v1688_v43  ;;  %v1677_v52 = vld [vmem:[%s3096_s11 + $0x10] sm:$0xff] }
 0x684   :  { %v1480_v26 = vsel %vm1477_vm3, %v1479_v27, %v1475_v63  ;;  %v1516_v23 = vadd.f32 %v2888_v18, %v1515_v1  ;;  %v1521_v42 = vand.u32 2147483647, %v2836_v0  ;;  %vm1519_vm11 = vmor %vm1517_vm2, %vm1518_vm1  ;;  %vm3123_vm5 = vcmask 1042434  }
 0x685   :  { %1586 = vperm.xlu1 %1998, %v1451_v46   ;;  %v1481_v24 = vmul.f32 %v2678_v32, %v1480_v26  ;;  %v1524_v39 = vor.u32 1.1754944e-38, %v1523_v3  ;;  %vm3124_vm10 = vcmask 1043459   ;;  %vm3125_vm0 = vcmask 1044484   ;;  %1695 = vmatpush.msra.mxu3 %v1687_v30  ;;  %vm3130_vm8 = vmmov %vm3123_vm5 }
 0x686   :  { %v1520_v20 = vsel %vm1519_vm11, %v2888_v18, %v1516_v23  ;;  %vm1522_vm4 = vcmp.eq.f32.partialorder %v1521_v42, 8.507059e+37  ;;  %vm3126_vm12 = vcmask 1045509   ;;  %vm3127_vm6 = vcmask 1046534   ;;  %vm3131_vm15 = vmmov %vm3124_vm10 }
 0x687   :  { %1598 = vperm.xlu0 %1997, %v1511_v57   ;;  %v1525_v12 = vsel %vm1522_vm4, %v1524_v39, %v1520_v20  ;;  %vm3128_vm7 = vcmask 1047559   ;;  %vm3129_vm13 = vcmask 64512   ;;  %1696 = vmatpush.msra.mxu3 %v1686_v15  ;;  %vm3133_vm14 = vmmov %vm3126_vm12  ;;  %v3074_v15 = vld [vmem:[%s3086_s1 + $0x8] sm:$0xff]  ;;  %vm3137_vm11 = vcmask 261120  }
 0x688   :  { %1604 = vperm.xlu2 %1999, %v1541_v49   ;;  %v1526_v17 = vmul.f32 %v2684_v11, %v1525_v12  ;;  %vm3134_vm3 = vmmov %vm3127_vm6 }
 0x689   :  { %1697 = vmatpush.msra.mxu3 %v1685_v35  ;;  %vm3135_vm1 = vmmov %vm3128_vm7 }
 0x68a   :  { %vm3136_vm2 = vmmov %vm3129_vm13 }
 0x68b   :  { %1698 = vmatpush.msra.mxu3 %v1684_v7  ;;  %vm3138_vm4 = vmmov %vm3137_vm11 }
 0x68d   :  { %1592 = vperm.xlu1 %1998, %v1481_v24   ;;  %1699 = vmatpush.msra.mxu3 %v1683_v50 }
 0x68f   :  { %1700 = vmatpush.msra.mxu3 %v1682_v16 }
 0x691   :  { %1701 = vmatpush.msra.mxu3 %v1681_v25 }
 0x693   :  { %1702 = vmatpush.msra.mxu3 %v1680_v56  ;;  %v1721_v56 = vperm.slane %v3074_v15, 1 }
 0x695   :  { %1601 = vperm.xlu1 %1998, %v1526_v17   ;;  %1703 = vmatpush.msra.mxu3 %v1679_v9 }
 0x697   :  { %1704 = vmatpush.msra.mxu3 %v1678_v21 }
 0x699   :  { %1705 = vmatpush.msra.mxu3 %v1677_v52 }
 0x69a   :  { %v1578_v44 = vpop.permute.xlu2 %1577 }
 0x69b   :  { %v1612_v8 = vperm.slane %v1578_v44, %v2532_v58 }
 0x6af   :  { %v1560_v53 = vpop.permute.xlu1 %1559 }
 0x6b0   :  { %v1606_v0 = vperm.slane %v1560_v53, %v2532_v58 }
 0x6b3   :  { %v1581_v11 = vpop.permute.xlu0 %1580 }
 0x6b4   :  { %v1613_v37 = vperm.slane %v1581_v11, %v2532_v58 }
 0x6b7   :  { %v1563_v33 = vpop.permute.xlu1 %1562 }
 0x6b8   :  { %v1607_v32 = vperm.slane %v1563_v33, %v2532_v58  ;;  %v2086_v33 = vld [vmem:[%s3086_s1] sm:$0xff]  ;;  %s2116_s1 = smov [#allocation2]  }
 0x6ba   :  { %v1622_v40 = vsel %vm1055_vm9, %v1607_v32, %v1606_v0 }
 0x6bf   :  { %v1566_v38 = vpop.permute.xlu1 %1565 }
 0x6c0   :  { %v1608_v36 = vperm.slane %v1566_v38, %v2532_v58  ;;  %v110_v38 = vperm.slane %v2086_v33, 2 }
 0x6c2   :  { %v1623_v29 = vsel %vm3123_vm5, %v1608_v36, %v1622_v40 }
 0x6c6   :  { %v1669_v11 = vpop.f32.mrf.mxu2 }
 0x6c7   :  { %v1569_v19 = vpop.permute.xlu1 %1568 }
 0x6c8   :  { %v1609_v34 = vperm.slane %v1569_v19, %v2532_v58  ;;  %v1676_v19 = vld [vmem:[%s3096_s11 + $0x8] sm:$0xff] }
 0x6c9   :  { %1706 = vmatpush.msra.mxu3 %v1676_v19 }
 0x6ca   :  { %v1624_v61 = vsel %vm3124_vm10, %v1609_v34, %v1623_v29 }
 0x6ce   :  { %v1672_v14 = vpop.f32.mrf.mxu2 }
 0x6cf   :  { %v1572_v31 = vpop.permute.xlu1 %1571 }
 0x6d0   :  { %v1610_v18 = vperm.slane %v1572_v31, %v2532_v58  ;;  %v135_v31 = vadd.f32 %v2417_v47, %v110_v38  ;;  %v138_v47 = vadd.f32 %v2423_v5, %v110_v38  ;;  %v1717_v5 = vld [vmem:[%s3097_s12] sm:$0xff] }
 0x6d2   :  { %v1625_v45 = vsel %vm3125_vm0, %v1610_v18, %v1624_v61  ;;  %v140_v32 = vrot.slane %v135_v31, 4  ;;  %v1720_v61 = vld [vmem:[%s3097_s12 + $0x18] sm:$0xff] }
 0x6d3   :  { %1740 = vmatpush.msrb.mxu0 %v1720_v61 }
 0x6d4   :  { %v141_v36 = vadd.f32 %v140_v32, %v135_v31  ;;  %v1800_v32 = vperm.slane %v3074_v15, 2 }
 0x6d6   :  { %v142_v0 = vrot.slane %v141_v36, 2 }
 0x6d7   :  { %v1575_v59 = vpop.permute.xlu1 %1574 }
 0x6d8   :  { %v1611_v6 = vperm.slane %v1575_v59, %v2532_v58  ;;  %v143_v34 = vadd.f32 %v142_v0, %v141_v36  ;;  %v1803_v0 = vperm.slane %v3074_v15, 3 }
 0x6da   :  { %v1626_v2 = vsel %vm3126_vm12, %v1611_v6, %v1625_v45  ;;  %v1596_v60 = vpop.permute.xlu2 %1595  ;;  %v144_v18 = vrot.slane %v143_v34, 1  ;;  %v1719_v6 = vld [vmem:[%s3097_s12 + $0x10] sm:$0xff]  ;;  %v146_v45 = vrot.slane %v138_v47, 4 }
 0x6db   :  { %v1627_v13 = vsel %vm3127_vm6, %v1612_v8, %v1626_v2  ;;  %v1618_v27 = vperm.slane %v1596_v60, %v2532_v58  ;;  %v1718_v8 = vld [vmem:[%s3097_s12 + $0x8] sm:$0xff]  ;;  %1741 = vmatpush.msrb.mxu0 %v1719_v6  ;;  %s1812_s12 = sshll.u32 %s2116_s1, 4  ;;  %s1813_s12 = int_to_ptr.vmem [resolvable:$true] %s1812_s12 }
 0x6dc   :  { %v1628_v54 = vsel %vm3128_vm7, %v1613_v37, %v1627_v13  ;;  %v145_v44 = vadd.f32 %v144_v18, %v143_v34  ;;  %v147_v37 = vadd.f32 %v146_v45, %v138_v47 }
 0x6dd   :  { %v1638_v48 = vsel %vm3129_vm13, %v1628_v54, 0.0  ;;  %1742 = vmatpush.msrb.mxu0 %v1718_v8 }
 0x6de   :  { %1639 = vadd.xlane.f32.xlu0 %v1638_v48  ;;  %v148_v2 = vrot.slane %v147_v37, 2 }
 0x6df   :  { %1743 = vmatpush.msrb.mxu0 %v1717_v5 }
 0x6e0   :  { %v149_v62 = vadd.f32 %v148_v2, %v147_v37 }
 0x6e2   :  { %v1605_v26 = vpop.permute.xlu2 %1604  ;;  %v150_v13 = vrot.slane %v149_v62, 1 }
 0x6e3   :  { %v1621_v20 = vperm.slane %v1605_v26, %v2532_v58 }
 0x6e4   :  { %v151_v54 = vadd.f32 %v150_v13, %v149_v62 }
 0x6ef   :  { %v1584_v22 = vpop.permute.xlu1 %1583 }
 0x6f0   :  { %v1614_v10 = vperm.slane %v1584_v22, %v2532_v58  ;;  %v1691_v22 = vperm.slane %v3074_v15, 0 }
 0x6f1   :  { %v1590_v28 = vpop.permute.xlu0 %1589 }
 0x6f2   :  { %v1616_v4 = vperm.slane %v1590_v28, %v2532_v58 }
 0x6f7   :  { %v1587_v51 = vpop.permute.xlu1 %1586 }
 0x6f8   :  { %v1615_v55 = vperm.slane %v1587_v51, %v2532_v58 }
 0x6f9   :  { %v1599_v49 = vpop.permute.xlu0 %1598 }
 0x6fa   :  { %v1629_v41 = vsel %vm1055_vm9, %v1615_v55, %v1614_v10  ;;  %vm3132_vm9 = vmmov %vm3125_vm0  ;;  %v1619_v3 = vperm.slane %v1599_v49, %v2532_v58 }
 0x6fb   :  { %v1630_v63 = vsel %vm3130_vm8, %v1616_v4, %v1629_v41  ;;  %v2115_v41 = vmov 128.0  }
 0x6fc   :  { %2078 = vrcp.f32 %v2115_v41 }
 0x6ff   :  { %v1593_v46 = vpop.permute.xlu1 %1592 }
 0x700   :  { %v1617_v57 = vperm.slane %v1593_v46, %v2532_v58 }
 0x702   :  { %v1631_v1 = vsel %vm3131_vm15, %v1617_v57, %v1630_v63  ;;  %v2079_v46 = vpop.eup %2078 }
 0x703   :  { %v1632_v23 = vsel %vm3132_vm9, %v1618_v27, %v1631_v1  ;;  %v1758_v52 = vmul.f32 128.0, %v2079_v46  ;;  %vm1762_vm5 = vweird.f32 %v2079_v46 }
 0x704   :  { %v1633_v39 = vsel %vm3133_vm14, %v1619_v3, %v1632_v23 }
 0x705   :  { %v1759_v4 = vsub.f32 1.0, %v1758_v52 }
 0x707   :  { %v1602_v24 = vpop.permute.xlu1 %1601  ;;  %v1760_v57 = vmul.f32 %v2079_v46, %v1759_v4 }
 0x708   :  { %v1620_v42 = vperm.slane %v1602_v24, %v2532_v58  ;;  %v1675_v58 = vld [vmem:[%s3096_s11] sm:$0xff] }
 0x709   :  { %1707 = vmatpush.msra.mxu3 %v1675_v58  ;;  %v1761_v63 = vadd.f32 %v2079_v46, %v1760_v57 }
 0x70a   :  { %v1634_v12 = vsel %vm3134_vm3, %v1620_v42, %v1633_v39 }
 0x70b   :  { %v1635_v17 = vsel %vm3135_vm1, %v1621_v20, %v1634_v12  ;;  %v1763_v1 = vsel %vm1762_vm5, %v2079_v46, %v1761_v63 }
 0x70c   :  { %v1641_v53 = vsel %vm3136_vm2, %v1635_v17, 0.0 }
 0x70d   :  { %1642 = vadd.xlane.f32.xlu1 %v1641_v53 }
 0x751   :  { %v1640_v40 = vpop.xlane.xlu0 %1639 }
 0x752   :  { %v1644_v29 = vmul.f32 %v1640_v40, %v145_v44 }
 0x754   :  { %v1670_v59 = vadd.f32 %v1669_v11, %v1644_v29 }
 0x756   :  { %1708 = vmatmul.f32.vlgmr.msra.gmra.mxu3 %v1670_v59 }
 0x780   :  { %v1643_v48 = vpop.xlane.xlu1 %1642 }
 0x781   :  { %v1645_v43 = vmul.f32 %v1643_v48, %v151_v54 }
 0x783   :  { %v1673_v30 = vadd.f32 %v1672_v14, %v1645_v43 }
 0x785   :  { %1711 = vmatmul.f32.gmra.mxu3 %v1673_v30 }
 0x7d9   :  { %v1709_v35 = vpop.f32.mrf.mxu3 }
 0x7da   :  { %v1710_v7 = vadd.f32 %v1709_v35, %v1691_v22 }
 0x7dc   :  { %v1715_v50 = vmax.f32 %v1710_v7, 0.0 }
 0x7de   :  { %1964 = vmatmul.msk.f32.vlgmr.msrb.gmra.mxu0 %vm3137_vm11, %v1715_v50 }
 0x808   :  { %v1712_v16 = vpop.f32.mrf.mxu3 }
 0x809   :  { %v1713_v51 = vadd.f32 %v1712_v16, %v1691_v22 }
 0x80b   :  { %v1716_v25 = vmax.f32 %v1713_v51, 0.0 }
 0x80d   :  { %1965 = vmatmul.msk.f32.gmra.mxu0 %vm3138_vm4, %v1716_v25 }
 0x85b   :  { %v1745_v28 = vpop.f32.mrf.mxu0 }
 0x85c   :  { %v1746_v55 = vadd.f32 %v1745_v28, %v1721_v56 }
 0x85e   :  { %v1751_v9 = vadd.f32 %v1746_v55, %v1670_v59 }
 0x860   :  { %1753 = vadd.xlane.f32.xlu2 %v1751_v9 }
 0x88a   :  { %v1748_v60 = vpop.f32.mrf.mxu0 }
 0x88b   :  { %v1749_v10 = vadd.f32 %v1748_v60, %v1721_v56 }
 0x88d   :  { %v1752_v21 = vadd.f32 %v1749_v10, %v1673_v30 }
 0x88f   :  { %1755 = vadd.xlane.f32.xlu0 %v1752_v21 }
 0x8d3   :  { %v1754_v27 = vpop.xlane.xlu2 %1753 }
 0x8d4   :  { %v1764_v49 = vmul.f32 %v1763_v1, %v1754_v27 }
 0x8d6   :  { %v1766_v26 = vsub.f32 %v1751_v9, %v1764_v49 }
 0x8d8   :  { %v1768_v23 = vmul.f32 %v1766_v26, %v1766_v26 }
 0x8da   :  { %1770 = vadd.xlane.f32.xlu2 %v1768_v23 }
 0x902   :  { %v1756_v3 = vpop.xlane.xlu0 %1755 }
 0x903   :  { %v1765_v24 = vmul.f32 %v1763_v1, %v1756_v3 }
 0x905   :  { %v1767_v42 = vsub.f32 %v1752_v21, %v1765_v24 }
 0x907   :  { %v1769_v20 = vmul.f32 %v1767_v42, %v1767_v42 }
 0x909   :  { %1772 = vadd.xlane.f32.xlu1 %v1769_v20 }
 0x94d   :  { %v1771_v39 = vpop.xlane.xlu2 %1770 }
 0x94e   :  { %v1774_v12 = vmul.f32 %v1771_v39, %v1763_v1 }
 0x950   :  { %v1776_v17 = vadd.f32 1e-05, %v1774_v12 }
 0x952   :  { %2080 = vrsqrt.f32 %v1776_v17  ;;  %vm1784_vm0 = vweird.f32 %v1776_v17 }
 0x958   :  { %v2081_v53 = vpop.eup %2080 }
 0x959   :  { %v1779_v33 = vmul.f32 %v2081_v53, %v1776_v17  ;;  %vm1785_vm10 = vweird.f32 %v2081_v53 }
 0x95a   :  { %vm1786_vm12 = vmor %vm1784_vm0, %vm1785_vm10 }
 0x95b   :  { %v1780_v38 = vmul.f32 %v2081_v53, %v1779_v33 }
 0x95d   :  { %v1781_v19 = vmul.f32 0.5, %v1780_v38 }
 0x95f   :  { %v1782_v58 = vsub.f32 1.5, %v1781_v19 }
 0x961   :  { %v1783_v31 = vmul.f32 %v2081_v53, %v1782_v58 }
 0x963   :  { %v1787_v36 = vsel %vm1786_vm12, %v2081_v53, %v1783_v31 }
 0x964   :  { %v1798_v34 = vmul.f32 %v1787_v36, %v1766_v26 }
 0x966   :  { %v1801_v18 = vmul.f32 %v1800_v32, %v1798_v34 }
 0x968   :  { %v1804_v44 = vadd.f32 %v1803_v0, %v1801_v18 }
 0x96a   :  { %1806 = vst [vmem:[#allocation2] sm:$0xff] %v1804_v44 }
 0x97c   :  { %v1773_v40 = vpop.xlane.xlu1 %1772 }
 0x97d   :  { %v1775_v11 = vmul.f32 %v1773_v40, %v1763_v1 }
 0x97f   :  { %v1777_v29 = vadd.f32 1e-05, %v1775_v11 }
 0x981   :  { %2082 = vrsqrt.f32 %v1777_v29  ;;  %vm1794_vm7 = vweird.f32 %v1777_v29 }
 0x987   :  { %v2083_v59 = vpop.eup %2082 }
 0x988   :  { %v1789_v61 = vmul.f32 %v2083_v59, %v1777_v29  ;;  %vm1795_vm6 = vweird.f32 %v2083_v59 }
 0x989   :  { %vm1796_vm13 = vmor %vm1794_vm7, %vm1795_vm6 }
 0x98a   :  { %v1790_v6 = vmul.f32 %v2083_v59, %v1789_v61 }
 0x98c   :  { %v1791_v47 = vmul.f32 0.5, %v1790_v6 }
 0x98e   :  { %v1792_v8 = vsub.f32 1.5, %v1791_v47 }
 0x990   :  { %v1793_v45 = vmul.f32 %v2083_v59, %v1792_v8 }
 0x992   :  { %v1797_v37 = vsel %vm1796_vm13, %v2083_v59, %v1793_v45 }
 0x993   :  { %v1799_v2 = vmul.f32 %v1797_v37, %v1767_v42 }
 0x995   :  { %v1802_v62 = vmul.f32 %v1800_v32, %v1799_v2 }
 0x997   :  { %v1805_v13 = vadd.f32 %v1803_v0, %v1802_v62 }
 0x999   :  { %1807 = vst [vmem:[#allocation2 + $0x8] sm:$0xff] %v1805_v13 }
 0x99a   :  { %1820 = dma.vmem_to_hbm [thread:$0]  %s1813_s12, 256, %s1815_s30, [#allocation3], %s2117_s14, %s2117_s14, %s2118_s9  }
 0x99b   :  { %2111 = dma.done.wait [#allocation3], 256  }
 0x99c   :  { %2112 = vsyncadd [#allocation3], 4294967040 }
 0x99d   :  { %1825 = vsyncpa [#allocation3], 1 }

</bundles_post_ra>
